<compile_context>
chip_gen: v5e
topology: v5e:2x2
jax: 0.10.0
libtpu: 0.0.40
codegen_flags: <defaults>
</compile_context>

<pallas_src>
import functools

import numpy as np
import jax
import jax.numpy as jnp
from jax.experimental import pallas as pl
from jax.experimental.pallas import tpu as pltpu


def _round_up(n, m):
    return (n + m - 1) // m * m


# ----------------------------------------------------------------------------
# Pure-JAX reference (original per-branch formulation) -- used only to verify
# ----------------------------------------------------------------------------
def _leaky_relu(x, negative_slope):
    return jnp.where(x > 0, x, negative_slope * x)


def _layer_math_ref(x0, x1, x2, ops, w, *, negative_slope):
    def mm(a, b):
        return jnp.dot(a, b, preferred_element_type=jnp.float32)

    def poly(L, z, W):
        acc = mm(z, W[0])
        zt = z
        for t in range(1, W.shape[0]):
            zt = mm(L, zt)
            acc = acc + mm(zt, W[t])
        return acc

    x1_to_0 = mm(ops["r0p"], x1)
    x0_to_1 = mm(ops["r1n"], x0)
    x2_to_1 = mm(ops["r1p"], x2)
    x1_to_2 = mm(ops["r2n"], x1)

    y0 = poly(ops["l0"], x0, w["w00"]) + poly(ops["l0"], x1_to_0, w["w0p"])
    y1 = (poly(ops["l1l"], x0_to_1, w["w1n"]) + poly(ops["l1l"], x1, w["w11"])
          + poly(ops["l1u"], x1, w["w12"]) + poly(ops["l1u"], x2_to_1, w["w1p"]))
    y2 = poly(ops["l2"], x1_to_2, w["w2n"]) + poly(ops["l2"], x2, w["w22"])
    return (_leaky_relu(y0, negative_slope),
            _leaky_relu(y1, negative_slope),
            _leaky_relu(y2, negative_slope))


# ----------------------------------------------------------------------------
# Host-side packing: few large, aligned slabs instead of 19 tiny inputs
# ----------------------------------------------------------------------------
_OP_NAMES = ("l0", "l1l", "l1u", "l2", "r0p", "r1n", "r1p", "r2n")


def pack_operators(ops):
    """Stack the 8 operators row-wise (rows padded to multiples of 8)."""
    ops_np = {k: np.asarray(v, np.float32) for k, v in ops.items()}
    max_c = max(ops_np[n].shape[1] for n in _OP_NAMES)
    blocks, meta, row = [], {}, 0
    for n in _OP_NAMES:
        a = ops_np[n]
        nr, nc = a.shape
        nrp = _round_up(nr, 8)
        blk = np.zeros((nrp, max_c), np.float32)
        blk[:nr, :nc] = a
        meta[n] = (row, nr, nc)          # static (offset, rows, cols)
        blocks.append(blk)
        row += nrp
    return jnp.asarray(np.concatenate(blocks, axis=0)), meta


def pack_layer_weights_slab(layer_weights, ks, feats):
    """Pack every layer's filter weights into one 2-D slab.

    Rows per layer are ordered so that ONE matmul against the tap-expanded
    feature block realizes the full sum of simplicial filters:
        [w00|w0p per tap] ; [w1n|w11 per tap ; w12|w1p per tap] ; [w2n|w22 per tap]
    Branches with a lower filter order are zero-padded to the group max.
    """
    T0 = max(ks["w00"], ks["w0p"]) + 1
    T1l = max(ks["w1n"], ks["w11"]) + 1
    T1u = max(ks["w12"], ks["w1p"]) + 1
    T2 = max(ks["w2n"], ks["w22"]) + 1
    taps = (T0, T1l, T1u, T2)

    def pad_taps(W, T):
        extra = T - W.shape[0]
        if extra > 0:
            W = jnp.concatenate(
                [W, jnp.zeros((extra,) + W.shape[1:], W.dtype)], axis=0)
        return W

    def group(w, a, b, T, f_in, f_out):
        wa = pad_taps(w[a], T)                       # (T, F_in, F_out)
        wb = pad_taps(w[b], T)                       # (T, F_in, F_out)
        g = jnp.concatenate([wa, wb], axis=1)        # (T, 2*F_in, F_out)
        return g.reshape(T * 2 * f_in, f_out)

    per_layer = []
    for l, w in enumerate(layer_weights):
        f_in, f_out = feats[l], feats[l + 1]
        W0 = group(w, "w00", "w0p", T0, f_in, f_out)
        W1 = jnp.concatenate([group(w, "w1n", "w11", T1l, f_in, f_out),
                              group(w, "w12", "w1p", T1u, f_in, f_out)], axis=0)
        W2 = group(w, "w2n", "w22", T2, f_in, f_out)
        per_layer.append(jnp.concatenate([W0, W1, W2], axis=0))

    max_rows = _round_up(max(p.shape[0] for p in per_layer), 8)
    max_cols = max(p.shape[1] for p in per_layer)
    padded = [jnp.pad(p, ((0, max_rows - p.shape[0]),
                          (0, max_cols - p.shape[1]))) for p in per_layer]
    slab = jnp.concatenate(padded, axis=0)           # (L*max_rows, max_cols)
    return slab, taps, max_rows


# ----------------------------------------------------------------------------
# Fused Pallas kernel: all layers of sccnn_stability in one program
# ----------------------------------------------------------------------------
def _sccnn_fused_kernel(x_ref, ops_ref, w_ref, y_ref, *,
                        feats, taps, op_meta, sizes, w_layer_stride,
                        negative_slope):
    n0, n1, n2, n0p, n1p, n2p = sizes
    T0, T1l, T1u, T2 = taps

    def mm(a, b):
        return jnp.dot(a, b, preferred_element_type=jnp.float32)

    def leaky(v):
        return jnp.where(v > 0, v, negative_slope * v)

    def op(name):
        r, nr, nc = op_meta[name]                    # static, sublane-aligned
        return ops_ref[r:r + nr, 0:nc]

    def tap_expand(L, z, T):
        # [z, L z, L^2 z, ...] along features -> one wide matmul operand
        cols = [z]
        zt = z
        for _ in range(T - 1):
            zt = mm(L, zt)
            cols.append(zt)
        return jnp.concatenate(cols, axis=1) if T > 1 else z

    x0 = x_ref[0:n0, :]
    x1 = x_ref[n0p:n0p + n1, :]
    x2 = x_ref[n0p + n1p:n0p + n1p + n2, :]

    # static unroll over layers: intermediates stay resident in VMEM/vregs
    for l in range(len(feats) - 1):
        f_in, f_out = feats[l], feats[l + 1]

        # normalized cross-simplex projections
        x1_to_0 = mm(op("r0p"), x1)      # edges     -> nodes
        x0_to_1 = mm(op("r1n"), x0)      # nodes     -> edges
        x2_to_1 = mm(op("r1p"), x2)      # triangles -> edges
        x1_to_2 = mm(op("r2n"), x1)      # edges     -> triangles

        # concatenate the two branches that share each Laplacian
        z0 = jnp.concatenate([x0, x1_to_0], axis=1)          # (n0, 2F)
        z1l = jnp.concatenate([x0_to_1, x1], axis=1)         # (n1, 2F)
        z1u = jnp.concatenate([x1, x2_to_1], axis=1)         # (n1, 2F)
        z2 = jnp.concatenate([x1_to_2, x2], axis=1)          # (n2, 2F)

        Z0 = tap_expand(op("l0"), z0, T0)                    # (n0, T0*2F)
        Z1 = jnp.concatenate([tap_expand(op("l1l"), z1l, T1l),
                              tap_expand(op("l1u"), z1u, T1u)], axis=1)
        Z2 = tap_expand(op("l2"), z2, T2)                    # (n2, T2*2F)

        r0 = T0 * 2 * f_in
        r1 = (T1l + T1u) * 2 * f_in
        r2 = T2 * 2 * f_in
        base = l * w_layer_stride
        W0 = w_ref[base:base + r0, 0:f_out]
        W1 = w_ref[base + r0:base + r0 + r1, 0:f_out]
        W2 = w_ref[base + r0 + r1:base + r0 + r1 + r2, 0:f_out]

        # one weight matmul per output instead of (K+1) per branch
        x0 = leaky(mm(Z0, W0))
        x1 = leaky(mm(Z1, W1))
        x2 = leaky(mm(Z2, W2))

    f_last = feats[-1]

    def pad_rows(y, target_rows):
        extra = target_rows - y.shape[0]
        if extra:
            y = jnp.concatenate(
                [y, jnp.zeros((extra, f_last), jnp.float32)], axis=0)
        return y

    # single contiguous, aligned store of all three outputs
    y_ref[...] = jnp.concatenate(
        [pad_rows(x0, n0p), pad_rows(x1, n1p), pad_rows(x2, n2p)], axis=0)


def sccnn_stability_forward_pallas(x, layer_weights, ops, filter_orders, feats,
                                   negative_slope=0.01):
    """Equivalent of sccnn_stability.forward (nn.Sequential of conv layers)."""
    x0, x1, x2 = x
    n0, n1, n2 = x0.shape[0], x1.shape[0], x2.shape[0]
    n0p, n1p, n2p = _round_up(n0, 8), _round_up(n1, 8), _round_up(n2, 8)
    f_last = feats[-1]

    def pad_rows(a, target):
        return jnp.pad(a, ((0, target - a.shape[0]), (0, 0)))

    # 3 input slabs, 1 output slab -> 4 DMAs total for the whole network
    x_slab = jnp.concatenate(
        [pad_rows(x0, n0p), pad_rows(x1, n1p), pad_rows(x2, n2p)], axis=0)
    ops_slab, op_meta = pack_operators(ops)
    w_slab, taps, w_layer_stride = pack_layer_weights_slab(
        layer_weights, filter_orders, feats)

    kernel = functools.partial(
        _sccnn_fused_kernel,
        feats=tuple(feats), taps=taps, op_meta=op_meta,
        sizes=(n0, n1, n2, n0p, n1p, n2p),
        w_layer_stride=w_layer_stride,
        negative_slope=negative_slope)

    out = pl.pallas_call(
        kernel,
        out_shape=jax.ShapeDtypeStruct((n0p + n1p + n2p, f_last), jnp.float32),
        in_specs=[pl.BlockSpec(memory_space=pltpu.MemorySpace.VMEM)] * 3,
        out_specs=pl.BlockSpec(memory_space=pltpu.MemorySpace.VMEM),
    )(x_slab, ops_slab, w_slab)

    return (out[0:n0],
            out[n0p:n0p + n1],
            out[n0p + n1p:n0p + n1p + n2])


# ----------------------------------------------------------------------------
# Deterministic synthetic simplicial complex, normalization and parameters
# ----------------------------------------------------------------------------
def build_triangulated_grid(rows, cols):
    """Triangulated grid -> incidence matrices B1 (n0,n1), B2 (n1,n2)."""
    def nid(r, c):
        return r * (cols + 1) + c

    triangles = []
    for r in range(rows):
        for c in range(cols):
            a, b = nid(r, c), nid(r, c + 1)
            cc, d = nid(r + 1, c), nid(r + 1, c + 1)
            triangles.append(tuple(sorted((a, b, d))))
            triangles.append(tuple(sorted((a, d, cc))))
    edges = set()
    for (i, j, k) in triangles:
        edges.update([(i, j), (j, k), (i, k)])
    edges = sorted(edges)
    edge_idx = {e: t for t, e in enumerate(edges)}
    n0 = (rows + 1) * (cols + 1)
    n1, n2 = len(edges), len(triangles)

    B1 = np.zeros((n0, n1), np.float32)
    for t, (u, v) in enumerate(edges):
        B1[u, t] = -1.0
        B1[v, t] = 1.0
    B2 = np.zeros((n1, n2), np.float32)
    for t, (i, j, k) in enumerate(triangles):
        B2[edge_idx[(i, j)], t] = 1.0
        B2[edge_idx[(j, k)], t] = 1.0
        B2[edge_idx[(i, k)], t] = -1.0
    return B1, B2


def build_operators(B1, B2):
    """d1..d5-normalized Hodge Laplacians / projections (Schaub et al. style)."""
    # TODO(synk): exact composition of d1..d5 in the reference
    # sccnn_conv_stability was reconstructed from the SCCNN paper's normalized
    # Hodge Laplacians; adjust if the original source differs.
    n1 = B1.shape[1]
    n2 = B2.shape[1]

    d2_vec = np.maximum(np.abs(B2).sum(axis=1), 1.0)          # (n1,)  "d2"
    d1_vec = 2.0 * (np.abs(B1) @ d2_vec)                      # (n0,)  "d1"
    D1i = np.diag(1.0 / d1_vec)
    D2 = np.diag(d2_vec)
    D2i = np.diag(1.0 / d2_vec)
    D3 = np.eye(n2, dtype=np.float32) / 3.0                   # "d3"
    D4 = np.eye(n2, dtype=np.float32)                         # "d4" (aux)
    D5 = np.eye(n1, dtype=np.float32)                         # "d5" (aux)

    ops = {
        "l0":  D1i @ B1 @ D2 @ B1.T,                          # (n0,n0)
        "l1l": D2 @ B1.T @ D1i @ B1,                          # (n1,n1)
        "l1u": B2 @ D3 @ B2.T @ D2i,                          # (n1,n1)
        "l2":  B2.T @ D2i @ B2 @ D3,                          # (n2,n2)
        "r0p": D1i @ B1 @ D2,                                 # edges->nodes
        "r1n": D2 @ B1.T @ D1i,                               # nodes->edges
        "r1p": D5 @ B2 @ D3,                                  # tris ->edges
        "r2n": D4 @ B2.T @ D2i,                               # edges->tris
    }
    return {k: jnp.asarray(v, jnp.float32) for k, v in ops.items()}


def init_layer_weights(key, f_in, f_out, ks):
    """Xavier-uniform (ReLU gain) weights W_* of shape (K+1, F_in, F_out)."""
    gain = np.sqrt(2.0)
    bound = gain * np.sqrt(6.0 / (f_in + f_out))
    w = {}
    for name in ("w00", "w0p", "w1n", "w11", "w12", "w1p", "w2n", "w22"):
        key, sub = jax.random.split(key)
        w[name] = jax.random.uniform(
            sub, (ks[name] + 1, f_in, f_out), jnp.float32, -bound, bound)
    return key, w


# ----------------------------------------------------------------------------
if __name__ == "__main__":
    # 2-simplicial complex: triangulated 3x3 grid -> n0=16, n1=33, n2=18
    B1, B2 = build_triangulated_grid(3, 3)
    ops = build_operators(B1, B2)
    n0, n1 = B1.shape
    n2 = B2.shape[1]

    # model config (matches sccnn_stability.__init__ semantics)
    F_in, F_intermediate, F_out = 8, [16, 16], 8
    num_features = [F_in] + list(F_intermediate) + [F_out]
    filter_orders = dict(w00=2, w0p=1, w1n=1, w11=2,
                         w12=2, w1p=1, w2n=1, w22=2)
    negative_slope = 0.01   # sigma = LeakyReLU

    key = jax.random.PRNGKey(0)
    layer_weights = []
    for layer in range(len(num_features) - 1):
        key, w = init_layer_weights(key, num_features[layer],
                                    num_features[layer + 1], filter_orders)
        layer_weights.append(w)

    key, k0, k1, k2 = jax.random.split(key, 4)
    x0 = jax.random.normal(k0, (n0, F_in), jnp.float32)
    x1 = jax.random.normal(k1, (n1, F_in), jnp.float32)
    x2 = jax.random.normal(k2, (n2, F_in), jnp.float32)

    # fused Pallas forward (all layers in one kernel)
    y0, y1, y2 = sccnn_stability_forward_pallas(
        (x0, x1, x2), layer_weights, ops, filter_orders, num_features,
        negative_slope)
    jax.block_until_ready((y0, y1, y2))

    # pure-JAX reference (original per-branch formulation)
    xr = (x0, x1, x2)
    for w in layer_weights:
        xr = _layer_math_ref(xr[0], xr[1], xr[2], ops, w,
                             negative_slope=negative_slope)
    r0, r1, r2 = xr

    for got, ref in ((y0, r0), (y1, r1), (y2, r2)):
        denom = jnp.maximum(jnp.max(jnp.abs(ref)), 1e-6)
        rel_err = jnp.max(jnp.abs(got - ref)) / denom
        assert bool(rel_err < 2e-2), f"mismatch, rel_err={float(rel_err)}"

    print("KERNEL_OK")
</pallas_src>

<mosaic_0001>
module attributes {stable_mosaic.version = 11 : i64} {
  func.func @_sccnn_fused_kernel(%arg0: memref<80x8xf32, #tpu.memory_space<vmem>>, %arg1: memref<240x33xf32, #tpu.memory_space<vmem>>, %arg2: memref<1152x16xf32, #tpu.memory_space<vmem>>, %arg3: memref<80x8xf32, #tpu.memory_space<vmem>>) attributes {dimension_semantics = [], scalar_prefetch = 0 : i64, scratch_operands = 0 : i64, tpu.core_type = #tpu.core_type<tc>} {
    %c0 = arith.constant 0 : index
    %c0_0 = arith.constant 0 : index
    %0 = vector.load %arg0[%c0, %c0_0] : memref<80x8xf32, #tpu.memory_space<vmem>>, vector<16x8xf32>
    %c16 = arith.constant 16 : index
    %c0_1 = arith.constant 0 : index
    %1 = vector.load %arg0[%c16, %c0_1] : memref<80x8xf32, #tpu.memory_space<vmem>>, vector<33x8xf32>
    %c56 = arith.constant 56 : index
    %c0_2 = arith.constant 0 : index
    %2 = vector.load %arg0[%c56, %c0_2] : memref<80x8xf32, #tpu.memory_space<vmem>>, vector<18x8xf32>
    %c120 = arith.constant 120 : index
    %c0_3 = arith.constant 0 : index
    %3 = vector.load %arg1[%c120, %c0_3] : memref<240x33xf32, #tpu.memory_space<vmem>>, vector<16x33xf32>
    %cst = arith.constant dense<0.000000e+00> : vector<16x8xf32>
    %4 = tpu.matmul %3, %1, %cst {dimension_numbers = #tpu.dot_dimension_numbers<[1], [0], [0], [1], [0, 0, 1, 1], [], []>} : vector<16x33xf32>, vector<33x8xf32>, vector<16x8xf32> -> vector<16x8xf32>
    %c136 = arith.constant 136 : index
    %c0_4 = arith.constant 0 : index
    %5 = vector.load %arg1[%c136, %c0_4] : memref<240x33xf32, #tpu.memory_space<vmem>>, vector<33x16xf32>
    %cst_5 = arith.constant dense<0.000000e+00> : vector<33x8xf32>
    %6 = tpu.matmul %5, %0, %cst_5 {dimension_numbers = #tpu.dot_dimension_numbers<[1], [0], [0], [1], [0, 0, 1, 1], [], []>} : vector<33x16xf32>, vector<16x8xf32>, vector<33x8xf32> -> vector<33x8xf32>
    %c176 = arith.constant 176 : index
    %c0_6 = arith.constant 0 : index
    %7 = vector.load %arg1[%c176, %c0_6] : memref<240x33xf32, #tpu.memory_space<vmem>>, vector<33x18xf32>
    %cst_7 = arith.constant dense<0.000000e+00> : vector<33x8xf32>
    %8 = tpu.matmul %7, %2, %cst_7 {dimension_numbers = #tpu.dot_dimension_numbers<[1], [0], [0], [1], [0, 0, 1, 1], [], []>} : vector<33x18xf32>, vector<18x8xf32>, vector<33x8xf32> -> vector<33x8xf32>
    %c216 = arith.constant 216 : index
    %c0_8 = arith.constant 0 : index
    %9 = vector.load %arg1[%c216, %c0_8] : memref<240x33xf32, #tpu.memory_space<vmem>>, vector<18x33xf32>
    %cst_9 = arith.constant dense<0.000000e+00> : vector<18x8xf32>
    %10 = tpu.matmul %9, %1, %cst_9 {dimension_numbers = #tpu.dot_dimension_numbers<[1], [0], [0], [1], [0, 0, 1, 1], [], []>} : vector<18x33xf32>, vector<33x8xf32>, vector<18x8xf32> -> vector<18x8xf32>
    %11 = tpu.concatenate %0, %4 in 1 : vector<16x8xf32>, vector<16x8xf32> -> vector<16x16xf32>
    %12 = tpu.concatenate %6, %1 in 1 : vector<33x8xf32>, vector<33x8xf32> -> vector<33x16xf32>
    %13 = tpu.concatenate %1, %8 in 1 : vector<33x8xf32>, vector<33x8xf32> -> vector<33x16xf32>
    %14 = tpu.concatenate %10, %2 in 1 : vector<18x8xf32>, vector<18x8xf32> -> vector<18x16xf32>
    %c0_10 = arith.constant 0 : index
    %c0_11 = arith.constant 0 : index
    %15 = vector.load %arg1[%c0_10, %c0_11] : memref<240x33xf32, #tpu.memory_space<vmem>>, vector<16x16xf32>
    %cst_12 = arith.constant dense<0.000000e+00> : vector<16x16xf32>
    %16 = tpu.matmul %15, %11, %cst_12 {dimension_numbers = #tpu.dot_dimension_numbers<[1], [0], [0], [1], [0, 0, 1, 1], [], []>} : vector<16x16xf32>, vector<16x16xf32>, vector<16x16xf32> -> vector<16x16xf32>
    %cst_13 = arith.constant dense<0.000000e+00> : vector<16x16xf32>
    %17 = tpu.matmul %15, %16, %cst_13 {dimension_numbers = #tpu.dot_dimension_numbers<[1], [0], [0], [1], [0, 0, 1, 1], [], []>} : vector<16x16xf32>, vector<16x16xf32>, vector<16x16xf32> -> vector<16x16xf32>
    %18 = tpu.concatenate %11, %16, %17 in 1 : vector<16x16xf32>, vector<16x16xf32>, vector<16x16xf32> -> vector<16x48xf32>
    %c16_14 = arith.constant 16 : index
    %c0_15 = arith.constant 0 : index
    %19 = vector.load %arg1[%c16_14, %c0_15] : memref<240x33xf32, #tpu.memory_space<vmem>>, vector<33x33xf32>
    %cst_16 = arith.constant dense<0.000000e+00> : vector<33x16xf32>
    %20 = tpu.matmul %19, %12, %cst_16 {dimension_numbers = #tpu.dot_dimension_numbers<[1], [0], [0], [1], [0, 0, 1, 1], [], []>} : vector<33x33xf32>, vector<33x16xf32>, vector<33x16xf32> -> vector<33x16xf32>
    %cst_17 = arith.constant dense<0.000000e+00> : vector<33x16xf32>
    %21 = tpu.matmul %19, %20, %cst_17 {dimension_numbers = #tpu.dot_dimension_numbers<[1], [0], [0], [1], [0, 0, 1, 1], [], []>} : vector<33x33xf32>, vector<33x16xf32>, vector<33x16xf32> -> vector<33x16xf32>
    %22 = tpu.concatenate %12, %20, %21 in 1 : vector<33x16xf32>, vector<33x16xf32>, vector<33x16xf32> -> vector<33x48xf32>
    %c56_18 = arith.constant 56 : index
    %c0_19 = arith.constant 0 : index
    %23 = vector.load %arg1[%c56_18, %c0_19] : memref<240x33xf32, #tpu.memory_space<vmem>>, vector<33x33xf32>
    %cst_20 = arith.constant dense<0.000000e+00> : vector<33x16xf32>
    %24 = tpu.matmul %23, %13, %cst_20 {dimension_numbers = #tpu.dot_dimension_numbers<[1], [0], [0], [1], [0, 0, 1, 1], [], []>} : vector<33x33xf32>, vector<33x16xf32>, vector<33x16xf32> -> vector<33x16xf32>
    %cst_21 = arith.constant dense<0.000000e+00> : vector<33x16xf32>
    %25 = tpu.matmul %23, %24, %cst_21 {dimension_numbers = #tpu.dot_dimension_numbers<[1], [0], [0], [1], [0, 0, 1, 1], [], []>} : vector<33x33xf32>, vector<33x16xf32>, vector<33x16xf32> -> vector<33x16xf32>
    %26 = tpu.concatenate %13, %24, %25 in 1 : vector<33x16xf32>, vector<33x16xf32>, vector<33x16xf32> -> vector<33x48xf32>
    %27 = tpu.concatenate %22, %26 in 1 : vector<33x48xf32>, vector<33x48xf32> -> vector<33x96xf32>
    %c96 = arith.constant 96 : index
    %c0_22 = arith.constant 0 : index
    %28 = vector.load %arg1[%c96, %c0_22] : memref<240x33xf32, #tpu.memory_space<vmem>>, vector<18x18xf32>
    %cst_23 = arith.constant dense<0.000000e+00> : vector<18x16xf32>
    %29 = tpu.matmul %28, %14, %cst_23 {dimension_numbers = #tpu.dot_dimension_numbers<[1], [0], [0], [1], [0, 0, 1, 1], [], []>} : vector<18x18xf32>, vector<18x16xf32>, vector<18x16xf32> -> vector<18x16xf32>
    %cst_24 = arith.constant dense<0.000000e+00> : vector<18x16xf32>
    %30 = tpu.matmul %28, %29, %cst_24 {dimension_numbers = #tpu.dot_dimension_numbers<[1], [0], [0], [1], [0, 0, 1, 1], [], []>} : vector<18x18xf32>, vector<18x16xf32>, vector<18x16xf32> -> vector<18x16xf32>
    %31 = tpu.concatenate %14, %29, %30 in 1 : vector<18x16xf32>, vector<18x16xf32>, vector<18x16xf32> -> vector<18x48xf32>
    %c0_25 = arith.constant 0 : index
    %c0_26 = arith.constant 0 : index
    %32 = vector.load %arg2[%c0_25, %c0_26] : memref<1152x16xf32, #tpu.memory_space<vmem>>, vector<48x16xf32>
    %c48 = arith.constant 48 : index
    %c0_27 = arith.constant 0 : index
    %33 = vector.load %arg2[%c48, %c0_27] : memref<1152x16xf32, #tpu.memory_space<vmem>>, vector<96x16xf32>
    %c144 = arith.constant 144 : index
    %c0_28 = arith.constant 0 : index
    %34 = vector.load %arg2[%c144, %c0_28] : memref<1152x16xf32, #tpu.memory_space<vmem>>, vector<48x16xf32>
    %cst_29 = arith.constant dense<0.000000e+00> : vector<16x16xf32>
    %35 = tpu.matmul %18, %32, %cst_29 {dimension_numbers = #tpu.dot_dimension_numbers<[1], [0], [0], [1], [0, 0, 1, 1], [], []>} : vector<16x48xf32>, vector<48x16xf32>, vector<16x16xf32> -> vector<16x16xf32>
    %cst_30 = arith.constant 0.000000e+00 : f32
    %36 = vector.broadcast %cst_30 : f32 to vector<16x16xf32>
    %37 = arith.cmpf ogt, %35, %36 : vector<16x16xf32>
    %cst_31 = arith.constant 0.00999999977 : f32
    %38 = vector.broadcast %cst_31 : f32 to vector<16x16xf32>
    %39 = arith.mulf %38, %35 : vector<16x16xf32>
    %40 = arith.select %37, %35, %39 : vector<16x16xi1>, vector<16x16xf32>
    %cst_32 = arith.constant dense<0.000000e+00> : vector<33x16xf32>
    %41 = tpu.matmul %27, %33, %cst_32 {dimension_numbers = #tpu.dot_dimension_numbers<[1], [0], [0], [1], [0, 0, 1, 1], [], []>} : vector<33x96xf32>, vector<96x16xf32>, vector<33x16xf32> -> vector<33x16xf32>
    %cst_33 = arith.constant 0.000000e+00 : f32
    %42 = vector.broadcast %cst_33 : f32 to vector<33x16xf32>
    %43 = arith.cmpf ogt, %41, %42 : vector<33x16xf32>
    %cst_34 = arith.constant 0.00999999977 : f32
    %44 = vector.broadcast %cst_34 : f32 to vector<33x16xf32>
    %45 = arith.mulf %44, %41 : vector<33x16xf32>
    %46 = arith.select %43, %41, %45 : vector<33x16xi1>, vector<33x16xf32>
    %cst_35 = arith.constant dense<0.000000e+00> : vector<18x16xf32>
    %47 = tpu.matmul %31, %34, %cst_35 {dimension_numbers = #tpu.dot_dimension_numbers<[1], [0], [0], [1], [0, 0, 1, 1], [], []>} : vector<18x48xf32>, vector<48x16xf32>, vector<18x16xf32> -> vector<18x16xf32>
    %cst_36 = arith.constant 0.000000e+00 : f32
    %48 = vector.broadcast %cst_36 : f32 to vector<18x16xf32>
    %49 = arith.cmpf ogt, %47, %48 : vector<18x16xf32>
    %cst_37 = arith.constant 0.00999999977 : f32
    %50 = vector.broadcast %cst_37 : f32 to vector<18x16xf32>
    %51 = arith.mulf %50, %47 : vector<18x16xf32>
    %52 = arith.select %49, %47, %51 : vector<18x16xi1>, vector<18x16xf32>
    %c120_38 = arith.constant 120 : index
    %c0_39 = arith.constant 0 : index
    %53 = vector.load %arg1[%c120_38, %c0_39] : memref<240x33xf32, #tpu.memory_space<vmem>>, vector<16x33xf32>
    %cst_40 = arith.constant dense<0.000000e+00> : vector<16x16xf32>
    %54 = tpu.matmul %53, %46, %cst_40 {dimension_numbers = #tpu.dot_dimension_numbers<[1], [0], [0], [1], [0, 0, 1, 1], [], []>} : vector<16x33xf32>, vector<33x16xf32>, vector<16x16xf32> -> vector<16x16xf32>
    %c136_41 = arith.constant 136 : index
    %c0_42 = arith.constant 0 : index
    %55 = vector.load %arg1[%c136_41, %c0_42] : memref<240x33xf32, #tpu.memory_space<vmem>>, vector<33x16xf32>
    %cst_43 = arith.constant dense<0.000000e+00> : vector<33x16xf32>
    %56 = tpu.matmul %55, %40, %cst_43 {dimension_numbers = #tpu.dot_dimension_numbers<[1], [0], [0], [1], [0, 0, 1, 1], [], []>} : vector<33x16xf32>, vector<16x16xf32>, vector<33x16xf32> -> vector<33x16xf32>
    %c176_44 = arith.constant 176 : index
    %c0_45 = arith.constant 0 : index
    %57 = vector.load %arg1[%c176_44, %c0_45] : memref<240x33xf32, #tpu.memory_space<vmem>>, vector<33x18xf32>
    %cst_46 = arith.constant dense<0.000000e+00> : vector<33x16xf32>
    %58 = tpu.matmul %57, %52, %cst_46 {dimension_numbers = #tpu.dot_dimension_numbers<[1], [0], [0], [1], [0, 0, 1, 1], [], []>} : vector<33x18xf32>, vector<18x16xf32>, vector<33x16xf32> -> vector<33x16xf32>
    %c216_47 = arith.constant 216 : index
    %c0_48 = arith.constant 0 : index
    %59 = vector.load %arg1[%c216_47, %c0_48] : memref<240x33xf32, #tpu.memory_space<vmem>>, vector<18x33xf32>
    %cst_49 = arith.constant dense<0.000000e+00> : vector<18x16xf32>
    %60 = tpu.matmul %59, %46, %cst_49 {dimension_numbers = #tpu.dot_dimension_numbers<[1], [0], [0], [1], [0, 0, 1, 1], [], []>} : vector<18x33xf32>, vector<33x16xf32>, vector<18x16xf32> -> vector<18x16xf32>
    %61 = tpu.concatenate %40, %54 in 1 : vector<16x16xf32>, vector<16x16xf32> -> vector<16x32xf32>
    %62 = tpu.concatenate %56, %46 in 1 : vector<33x16xf32>, vector<33x16xf32> -> vector<33x32xf32>
    %63 = tpu.concatenate %46, %58 in 1 : vector<33x16xf32>, vector<33x16xf32> -> vector<33x32xf32>
    %64 = tpu.concatenate %60, %52 in 1 : vector<18x16xf32>, vector<18x16xf32> -> vector<18x32xf32>
    %c0_50 = arith.constant 0 : index
    %c0_51 = arith.constant 0 : index
    %65 = vector.load %arg1[%c0_50, %c0_51] : memref<240x33xf32, #tpu.memory_space<vmem>>, vector<16x16xf32>
    %cst_52 = arith.constant dense<0.000000e+00> : vector<16x32xf32>
    %66 = tpu.matmul %65, %61, %cst_52 {dimension_numbers = #tpu.dot_dimension_numbers<[1], [0], [0], [1], [0, 0, 1, 1], [], []>} : vector<16x16xf32>, vector<16x32xf32>, vector<16x32xf32> -> vector<16x32xf32>
    %cst_53 = arith.constant dense<0.000000e+00> : vector<16x32xf32>
    %67 = tpu.matmul %65, %66, %cst_53 {dimension_numbers = #tpu.dot_dimension_numbers<[1], [0], [0], [1], [0, 0, 1, 1], [], []>} : vector<16x16xf32>, vector<16x32xf32>, vector<16x32xf32> -> vector<16x32xf32>
    %68 = tpu.concatenate %61, %66, %67 in 1 : vector<16x32xf32>, vector<16x32xf32>, vector<16x32xf32> -> vector<16x96xf32>
    %c16_54 = arith.constant 16 : index
    %c0_55 = arith.constant 0 : index
    %69 = vector.load %arg1[%c16_54, %c0_55] : memref<240x33xf32, #tpu.memory_space<vmem>>, vector<33x33xf32>
    %cst_56 = arith.constant dense<0.000000e+00> : vector<33x32xf32>
    %70 = tpu.matmul %69, %62, %cst_56 {dimension_numbers = #tpu.dot_dimension_numbers<[1], [0], [0], [1], [0, 0, 1, 1], [], []>} : vector<33x33xf32>, vector<33x32xf32>, vector<33x32xf32> -> vector<33x32xf32>
    %cst_57 = arith.constant dense<0.000000e+00> : vector<33x32xf32>
    %71 = tpu.matmul %69, %70, %cst_57 {dimension_numbers = #tpu.dot_dimension_numbers<[1], [0], [0], [1], [0, 0, 1, 1], [], []>} : vector<33x33xf32>, vector<33x32xf32>, vector<33x32xf32> -> vector<33x32xf32>
    %72 = tpu.concatenate %62, %70, %71 in 1 : vector<33x32xf32>, vector<33x32xf32>, vector<33x32xf32> -> vector<33x96xf32>
    %c56_58 = arith.constant 56 : index
    %c0_59 = arith.constant 0 : index
    %73 = vector.load %arg1[%c56_58, %c0_59] : memref<240x33xf32, #tpu.memory_space<vmem>>, vector<33x33xf32>
    %cst_60 = arith.constant dense<0.000000e+00> : vector<33x32xf32>
    %74 = tpu.matmul %73, %63, %cst_60 {dimension_numbers = #tpu.dot_dimension_numbers<[1], [0], [0], [1], [0, 0, 1, 1], [], []>} : vector<33x33xf32>, vector<33x32xf32>, vector<33x32xf32> -> vector<33x32xf32>
    %cst_61 = arith.constant dense<0.000000e+00> : vector<33x32xf32>
    %75 = tpu.matmul %73, %74, %cst_61 {dimension_numbers = #tpu.dot_dimension_numbers<[1], [0], [0], [1], [0, 0, 1, 1], [], []>} : vector<33x33xf32>, vector<33x32xf32>, vector<33x32xf32> -> vector<33x32xf32>
    %76 = tpu.concatenate %63, %74, %75 in 1 : vector<33x32xf32>, vector<33x32xf32>, vector<33x32xf32> -> vector<33x96xf32>
    %77 = tpu.concatenate %72, %76 in 1 : vector<33x96xf32>, vector<33x96xf32> -> vector<33x192xf32>
    %c96_62 = arith.constant 96 : index
    %c0_63 = arith.constant 0 : index
    %78 = vector.load %arg1[%c96_62, %c0_63] : memref<240x33xf32, #tpu.memory_space<vmem>>, vector<18x18xf32>
    %cst_64 = arith.constant dense<0.000000e+00> : vector<18x32xf32>
    %79 = tpu.matmul %78, %64, %cst_64 {dimension_numbers = #tpu.dot_dimension_numbers<[1], [0], [0], [1], [0, 0, 1, 1], [], []>} : vector<18x18xf32>, vector<18x32xf32>, vector<18x32xf32> -> vector<18x32xf32>
    %cst_65 = arith.constant dense<0.000000e+00> : vector<18x32xf32>
    %80 = tpu.matmul %78, %79, %cst_65 {dimension_numbers = #tpu.dot_dimension_numbers<[1], [0], [0], [1], [0, 0, 1, 1], [], []>} : vector<18x18xf32>, vector<18x32xf32>, vector<18x32xf32> -> vector<18x32xf32>
    %81 = tpu.concatenate %64, %79, %80 in 1 : vector<18x32xf32>, vector<18x32xf32>, vector<18x32xf32> -> vector<18x96xf32>
    %c384 = arith.constant 384 : index
    %c0_66 = arith.constant 0 : index
    %82 = vector.load %arg2[%c384, %c0_66] : memref<1152x16xf32, #tpu.memory_space<vmem>>, vector<96x16xf32>
    %c480 = arith.constant 480 : index
    %c0_67 = arith.constant 0 : index
    %83 = vector.load %arg2[%c480, %c0_67] : memref<1152x16xf32, #tpu.memory_space<vmem>>, vector<192x16xf32>
    %c672 = arith.constant 672 : index
    %c0_68 = arith.constant 0 : index
    %84 = vector.load %arg2[%c672, %c0_68] : memref<1152x16xf32, #tpu.memory_space<vmem>>, vector<96x16xf32>
    %cst_69 = arith.constant dense<0.000000e+00> : vector<16x16xf32>
    %85 = tpu.matmul %68, %82, %cst_69 {dimension_numbers = #tpu.dot_dimension_numbers<[1], [0], [0], [1], [0, 0, 1, 1], [], []>} : vector<16x96xf32>, vector<96x16xf32>, vector<16x16xf32> -> vector<16x16xf32>
    %cst_70 = arith.constant 0.000000e+00 : f32
    %86 = vector.broadcast %cst_70 : f32 to vector<16x16xf32>
    %87 = arith.cmpf ogt, %85, %86 : vector<16x16xf32>
    %cst_71 = arith.constant 0.00999999977 : f32
    %88 = vector.broadcast %cst_71 : f32 to vector<16x16xf32>
    %89 = arith.mulf %88, %85 : vector<16x16xf32>
    %90 = arith.select %87, %85, %89 : vector<16x16xi1>, vector<16x16xf32>
    %cst_72 = arith.constant dense<0.000000e+00> : vector<33x16xf32>
    %91 = tpu.matmul %77, %83, %cst_72 {dimension_numbers = #tpu.dot_dimension_numbers<[1], [0], [0], [1], [0, 0, 1, 1], [], []>} : vector<33x192xf32>, vector<192x16xf32>, vector<33x16xf32> -> vector<33x16xf32>
    %cst_73 = arith.constant 0.000000e+00 : f32
    %92 = vector.broadcast %cst_73 : f32 to vector<33x16xf32>
    %93 = arith.cmpf ogt, %91, %92 : vector<33x16xf32>
    %cst_74 = arith.constant 0.00999999977 : f32
    %94 = vector.broadcast %cst_74 : f32 to vector<33x16xf32>
    %95 = arith.mulf %94, %91 : vector<33x16xf32>
    %96 = arith.select %93, %91, %95 : vector<33x16xi1>, vector<33x16xf32>
    %cst_75 = arith.constant dense<0.000000e+00> : vector<18x16xf32>
    %97 = tpu.matmul %81, %84, %cst_75 {dimension_numbers = #tpu.dot_dimension_numbers<[1], [0], [0], [1], [0, 0, 1, 1], [], []>} : vector<18x96xf32>, vector<96x16xf32>, vector<18x16xf32> -> vector<18x16xf32>
    %cst_76 = arith.constant 0.000000e+00 : f32
    %98 = vector.broadcast %cst_76 : f32 to vector<18x16xf32>
    %99 = arith.cmpf ogt, %97, %98 : vector<18x16xf32>
    %cst_77 = arith.constant 0.00999999977 : f32
    %100 = vector.broadcast %cst_77 : f32 to vector<18x16xf32>
    %101 = arith.mulf %100, %97 : vector<18x16xf32>
    %102 = arith.select %99, %97, %101 : vector<18x16xi1>, vector<18x16xf32>
    %c120_78 = arith.constant 120 : index
    %c0_79 = arith.constant 0 : index
    %103 = vector.load %arg1[%c120_78, %c0_79] : memref<240x33xf32, #tpu.memory_space<vmem>>, vector<16x33xf32>
    %cst_80 = arith.constant dense<0.000000e+00> : vector<16x16xf32>
    %104 = tpu.matmul %103, %96, %cst_80 {dimension_numbers = #tpu.dot_dimension_numbers<[1], [0], [0], [1], [0, 0, 1, 1], [], []>} : vector<16x33xf32>, vector<33x16xf32>, vector<16x16xf32> -> vector<16x16xf32>
    %c136_81 = arith.constant 136 : index
    %c0_82 = arith.constant 0 : index
    %105 = vector.load %arg1[%c136_81, %c0_82] : memref<240x33xf32, #tpu.memory_space<vmem>>, vector<33x16xf32>
    %cst_83 = arith.constant dense<0.000000e+00> : vector<33x16xf32>
    %106 = tpu.matmul %105, %90, %cst_83 {dimension_numbers = #tpu.dot_dimension_numbers<[1], [0], [0], [1], [0, 0, 1, 1], [], []>} : vector<33x16xf32>, vector<16x16xf32>, vector<33x16xf32> -> vector<33x16xf32>
    %c176_84 = arith.constant 176 : index
    %c0_85 = arith.constant 0 : index
    %107 = vector.load %arg1[%c176_84, %c0_85] : memref<240x33xf32, #tpu.memory_space<vmem>>, vector<33x18xf32>
    %cst_86 = arith.constant dense<0.000000e+00> : vector<33x16xf32>
    %108 = tpu.matmul %107, %102, %cst_86 {dimension_numbers = #tpu.dot_dimension_numbers<[1], [0], [0], [1], [0, 0, 1, 1], [], []>} : vector<33x18xf32>, vector<18x16xf32>, vector<33x16xf32> -> vector<33x16xf32>
    %c216_87 = arith.constant 216 : index
    %c0_88 = arith.constant 0 : index
    %109 = vector.load %arg1[%c216_87, %c0_88] : memref<240x33xf32, #tpu.memory_space<vmem>>, vector<18x33xf32>
    %cst_89 = arith.constant dense<0.000000e+00> : vector<18x16xf32>
    %110 = tpu.matmul %109, %96, %cst_89 {dimension_numbers = #tpu.dot_dimension_numbers<[1], [0], [0], [1], [0, 0, 1, 1], [], []>} : vector<18x33xf32>, vector<33x16xf32>, vector<18x16xf32> -> vector<18x16xf32>
    %111 = tpu.concatenate %90, %104 in 1 : vector<16x16xf32>, vector<16x16xf32> -> vector<16x32xf32>
    %112 = tpu.concatenate %106, %96 in 1 : vector<33x16xf32>, vector<33x16xf32> -> vector<33x32xf32>
    %113 = tpu.concatenate %96, %108 in 1 : vector<33x16xf32>, vector<33x16xf32> -> vector<33x32xf32>
    %114 = tpu.concatenate %110, %102 in 1 : vector<18x16xf32>, vector<18x16xf32> -> vector<18x32xf32>
    %c0_90 = arith.constant 0 : index
    %c0_91 = arith.constant 0 : index
    %115 = vector.load %arg1[%c0_90, %c0_91] : memref<240x33xf32, #tpu.memory_space<vmem>>, vector<16x16xf32>
    %cst_92 = arith.constant dense<0.000000e+00> : vector<16x32xf32>
    %116 = tpu.matmul %115, %111, %cst_92 {dimension_numbers = #tpu.dot_dimension_numbers<[1], [0], [0], [1], [0, 0, 1, 1], [], []>} : vector<16x16xf32>, vector<16x32xf32>, vector<16x32xf32> -> vector<16x32xf32>
    %cst_93 = arith.constant dense<0.000000e+00> : vector<16x32xf32>
    %117 = tpu.matmul %115, %116, %cst_93 {dimension_numbers = #tpu.dot_dimension_numbers<[1], [0], [0], [1], [0, 0, 1, 1], [], []>} : vector<16x16xf32>, vector<16x32xf32>, vector<16x32xf32> -> vector<16x32xf32>
    %118 = tpu.concatenate %111, %116, %117 in 1 : vector<16x32xf32>, vector<16x32xf32>, vector<16x32xf32> -> vector<16x96xf32>
    %c16_94 = arith.constant 16 : index
    %c0_95 = arith.constant 0 : index
    %119 = vector.load %arg1[%c16_94, %c0_95] : memref<240x33xf32, #tpu.memory_space<vmem>>, vector<33x33xf32>
    %cst_96 = arith.constant dense<0.000000e+00> : vector<33x32xf32>
    %120 = tpu.matmul %119, %112, %cst_96 {dimension_numbers = #tpu.dot_dimension_numbers<[1], [0], [0], [1], [0, 0, 1, 1], [], []>} : vector<33x33xf32>, vector<33x32xf32>, vector<33x32xf32> -> vector<33x32xf32>
    %cst_97 = arith.constant dense<0.000000e+00> : vector<33x32xf32>
    %121 = tpu.matmul %119, %120, %cst_97 {dimension_numbers = #tpu.dot_dimension_numbers<[1], [0], [0], [1], [0, 0, 1, 1], [], []>} : vector<33x33xf32>, vector<33x32xf32>, vector<33x32xf32> -> vector<33x32xf32>
    %122 = tpu.concatenate %112, %120, %121 in 1 : vector<33x32xf32>, vector<33x32xf32>, vector<33x32xf32> -> vector<33x96xf32>
    %c56_98 = arith.constant 56 : index
    %c0_99 = arith.constant 0 : index
    %123 = vector.load %arg1[%c56_98, %c0_99] : memref<240x33xf32, #tpu.memory_space<vmem>>, vector<33x33xf32>
    %cst_100 = arith.constant dense<0.000000e+00> : vector<33x32xf32>
    %124 = tpu.matmul %123, %113, %cst_100 {dimension_numbers = #tpu.dot_dimension_numbers<[1], [0], [0], [1], [0, 0, 1, 1], [], []>} : vector<33x33xf32>, vector<33x32xf32>, vector<33x32xf32> -> vector<33x32xf32>
    %cst_101 = arith.constant dense<0.000000e+00> : vector<33x32xf32>
    %125 = tpu.matmul %123, %124, %cst_101 {dimension_numbers = #tpu.dot_dimension_numbers<[1], [0], [0], [1], [0, 0, 1, 1], [], []>} : vector<33x33xf32>, vector<33x32xf32>, vector<33x32xf32> -> vector<33x32xf32>
    %126 = tpu.concatenate %113, %124, %125 in 1 : vector<33x32xf32>, vector<33x32xf32>, vector<33x32xf32> -> vector<33x96xf32>
    %127 = tpu.concatenate %122, %126 in 1 : vector<33x96xf32>, vector<33x96xf32> -> vector<33x192xf32>
    %c96_102 = arith.constant 96 : index
    %c0_103 = arith.constant 0 : index
    %128 = vector.load %arg1[%c96_102, %c0_103] : memref<240x33xf32, #tpu.memory_space<vmem>>, vector<18x18xf32>
    %cst_104 = arith.constant dense<0.000000e+00> : vector<18x32xf32>
    %129 = tpu.matmul %128, %114, %cst_104 {dimension_numbers = #tpu.dot_dimension_numbers<[1], [0], [0], [1], [0, 0, 1, 1], [], []>} : vector<18x18xf32>, vector<18x32xf32>, vector<18x32xf32> -> vector<18x32xf32>
    %cst_105 = arith.constant dense<0.000000e+00> : vector<18x32xf32>
    %130 = tpu.matmul %128, %129, %cst_105 {dimension_numbers = #tpu.dot_dimension_numbers<[1], [0], [0], [1], [0, 0, 1, 1], [], []>} : vector<18x18xf32>, vector<18x32xf32>, vector<18x32xf32> -> vector<18x32xf32>
    %131 = tpu.concatenate %114, %129, %130 in 1 : vector<18x32xf32>, vector<18x32xf32>, vector<18x32xf32> -> vector<18x96xf32>
    %c768 = arith.constant 768 : index
    %c0_106 = arith.constant 0 : index
    %132 = vector.load %arg2[%c768, %c0_106] : memref<1152x16xf32, #tpu.memory_space<vmem>>, vector<96x8xf32>
    %c864 = arith.constant 864 : index
    %c0_107 = arith.constant 0 : index
    %133 = vector.load %arg2[%c864, %c0_107] : memref<1152x16xf32, #tpu.memory_space<vmem>>, vector<192x8xf32>
    %c1056 = arith.constant 1056 : index
    %c0_108 = arith.constant 0 : index
    %134 = vector.load %arg2[%c1056, %c0_108] : memref<1152x16xf32, #tpu.memory_space<vmem>>, vector<96x8xf32>
    %cst_109 = arith.constant dense<0.000000e+00> : vector<16x8xf32>
    %135 = tpu.matmul %118, %132, %cst_109 {dimension_numbers = #tpu.dot_dimension_numbers<[1], [0], [0], [1], [0, 0, 1, 1], [], []>} : vector<16x96xf32>, vector<96x8xf32>, vector<16x8xf32> -> vector<16x8xf32>
    %cst_110 = arith.constant 0.000000e+00 : f32
    %136 = vector.broadcast %cst_110 : f32 to vector<16x8xf32>
    %137 = arith.cmpf ogt, %135, %136 : vector<16x8xf32>
    %cst_111 = arith.constant 0.00999999977 : f32
    %138 = vector.broadcast %cst_111 : f32 to vector<16x8xf32>
    %139 = arith.mulf %138, %135 : vector<16x8xf32>
    %140 = arith.select %137, %135, %139 : vector<16x8xi1>, vector<16x8xf32>
    %cst_112 = arith.constant dense<0.000000e+00> : vector<33x8xf32>
    %141 = tpu.matmul %127, %133, %cst_112 {dimension_numbers = #tpu.dot_dimension_numbers<[1], [0], [0], [1], [0, 0, 1, 1], [], []>} : vector<33x192xf32>, vector<192x8xf32>, vector<33x8xf32> -> vector<33x8xf32>
    %cst_113 = arith.constant 0.000000e+00 : f32
    %142 = vector.broadcast %cst_113 : f32 to vector<33x8xf32>
    %143 = arith.cmpf ogt, %141, %142 : vector<33x8xf32>
    %cst_114 = arith.constant 0.00999999977 : f32
    %144 = vector.broadcast %cst_114 : f32 to vector<33x8xf32>
    %145 = arith.mulf %144, %141 : vector<33x8xf32>
    %146 = arith.select %143, %141, %145 : vector<33x8xi1>, vector<33x8xf32>
    %cst_115 = arith.constant dense<0.000000e+00> : vector<18x8xf32>
    %147 = tpu.matmul %131, %134, %cst_115 {dimension_numbers = #tpu.dot_dimension_numbers<[1], [0], [0], [1], [0, 0, 1, 1], [], []>} : vector<18x96xf32>, vector<96x8xf32>, vector<18x8xf32> -> vector<18x8xf32>
    %cst_116 = arith.constant 0.000000e+00 : f32
    %148 = vector.broadcast %cst_116 : f32 to vector<18x8xf32>
    %149 = arith.cmpf ogt, %147, %148 : vector<18x8xf32>
    %cst_117 = arith.constant 0.00999999977 : f32
    %150 = vector.broadcast %cst_117 : f32 to vector<18x8xf32>
    %151 = arith.mulf %150, %147 : vector<18x8xf32>
    %152 = arith.select %149, %147, %151 : vector<18x8xi1>, vector<18x8xf32>
    %cst_118 = arith.constant 0.000000e+00 : f32
    %153 = vector.broadcast %cst_118 : f32 to vector<7x8xf32>
    %154 = tpu.concatenate %146, %153 in 0 : vector<33x8xf32>, vector<7x8xf32> -> vector<40x8xf32>
    %cst_119 = arith.constant 0.000000e+00 : f32
    %155 = vector.broadcast %cst_119 : f32 to vector<6x8xf32>
    %156 = tpu.concatenate %152, %155 in 0 : vector<18x8xf32>, vector<6x8xf32> -> vector<24x8xf32>
    %157 = tpu.concatenate %140, %154, %156 in 0 : vector<16x8xf32>, vector<40x8xf32>, vector<24x8xf32> -> vector<80x8xf32>
    %c0_120 = arith.constant 0 : index
    %c0_121 = arith.constant 0 : index
    %158 = vector.load %arg3[%c0_120, %c0_121] : memref<80x8xf32, #tpu.memory_space<vmem>>, vector<80x8xf32>
    tpu.vector_store %arg3[%c0_120, %c0_121], %157 {strides = array<i32>} : memref<80x8xf32, #tpu.memory_space<vmem>>, vector<80x8xf32>,
    return
  }
}

</mosaic_0001>

<bundles_post_ra>
// kernel: tpu_custom_call.1
= control target key start
LH: loop header
LB: loop body
LE: loop exit
PB: predicated region body
PF: predicated region fallthrough
CT: control target
= control target key end

     0   :  { %vm33_vm0 = vcmask 1040384   ;;  %vm65_vm1 = vcmask 130048   ;;  %s2869_s24 = smov 8   ;;  %vm134_vm2 = vcmask 1041408   ;;  %vm26_vm3 = vcmask 269312   ;;  %s2872_s11 = smov 48   ;;  %s4579_s0 = inlined_call_operand.vmem [shape: f32[80,8], index: 0, kind: input, shape index: {}]   ;;  %s4580_s1 = inlined_call_operand.vmem [shape: f32[240,33], index: 1, kind: input, shape index: {}]   ;;  %s4581_s2 = inlined_call_operand.vmem [shape: f32[1152,16], index: 2, kind: input, shape index: {}]   ;;  %s4582_s3 = inlined_call_operand.vmem [shape: f32[80,8], index: 3, kind: output, shape index: {}]  }
   0x1   :  { %v2898_v0 = vld [vmem:[%s4579_s0 + $0x30] sm:$0x1]  ;;  %v2903_v1 = vld [vmem:[%s4579_s0 + $0x8] sm:$0xff]  ;;  %v2916_v3 = vld [vmem:[%s4579_s0] sm:$0xff]  ;;  %vm118_vm4 = vcmask 146432   ;;  %vm216_vm5 = vcmask 64512  }
   0x2   :  { %v2908_v2 = vld [vmem:[%s4579_s0 + $0x28] sm:$0xff]  ;;  %2591 = vmatpush.msk.msra.mxu0 %vm33_vm0, %v2898_v0  ;;  %2783 = vmatpush.msra.mxu2 %v2903_v1  ;;  %v2921_v4 = vld [vmem:[%s4580_s1 + $0x98] sm:$0xff]  ;;  %v2926_v5 = vld [vmem:[%s4579_s0 + $0x20] sm:$0xff]  ;;  %vm354_vm6 = vcmask 261120   ;;  %vm655_vm7 = vcmask 392192   ;;  %vm819_vm8 = vcmask 785408  }
   0x3   :  { %231 = vrot.lane.b32.xlu1 %v2898_v0, %s2869_s24  ;;  %95 = vmatpush.msra.mxu1 %v2903_v1  ;;  %v2938_v6 = vld [vmem:[%s4579_s0 + $0x18] sm:$0xff]  ;;  %v23_v7 = vld [vmem:[%s4579_s0 + $0x48] sm:$0x3]  ;;  %v22_v8 = vld [vmem:[%s4579_s0 + $0x40] sm:$0xff]  ;;  %s2873_s8 = smov 64   ;;  %s2874_s7 = smov 96  }
   0x4   :  { %49 = vmatpush.msra.mxu0 %v2908_v2  ;;  %2784 = vmatpush.msra.mxu2 %v2916_v3  ;;  %v2953_v9 = vld [vmem:[%s4579_s0 + $0x10] sm:$0xff]  ;;  %v21_v10 = vld [vmem:[%s4579_s0 + $0x38] sm:$0xff]  ;;  %v2972_v12 = vld [vmem:[%s4580_s1 + $0xa0] sm:$0xff]  ;;  %s2871_s0 = smov 32  }
   0x5   :  { %2596 = vmatmul.msk.f32.vlgmr.msra.gmra.mxu2 %vm65_vm1, %v2921_v4  ;;  %227 = vrot.lane.b32.xlu2 %v2926_v5, %s2869_s24  ;;  %v2965_v11 = vld [vmem:[%s4580_s1 + $0x78] sm:$0xff]  ;;  %v2987_v13 = vld [vmem:[%s4580_s1 + $0x80] sm:$0xff]  ;;  %v2993_v14 = vld [vmem:[%s4580_s1 + $0xa8] sm:$0x1] }
   0x6   :  { %50 = vmatpush.msra.mxu0 %v2926_v5  ;;  %2599 = vmatpush.msk.msrb.mxu2 %vm134_vm2, %v23_v7  ;;  %v3002_v15 = vld [vmem:[%s4580_s1 + $0xb0] sm:$0xff]  ;;  %v3009_v16 = vld [vmem:[%s4580_s1 + $0xb8] sm:$0xff]  ;;  %v3016_v17 = vld [vmem:[%s4580_s1 + $0xc0] sm:$0xff] }
   0x7   :  { %96 = vmatpush.msra.mxu1 %v2916_v3  ;;  %2605 = vmatpush.msk.msra.mxu3 %vm33_vm0, %v2898_v0  ;;  %v3023_v18 = vld [vmem:[%s4580_s1 + $0xc8] sm:$0xff]  ;;  %v3030_v19 = vld [vmem:[%s4580_s1 + $0xd0] sm:$0x1]  ;;  %v3068_v38 = vld [vmem:[%s4580_s1] sm:$0xff] }
   0x8   :  { %51 = vmatpush.msra.mxu0 %v2938_v6  ;;  %152 = vmatpush.msrb.mxu2 %v22_v8  ;;  %v3037_v20 = vld [vmem:[%s4580_s1 + $0x88] sm:$0xff]  ;;  %v3044_v21 = vld [vmem:[%s4580_s1 + $0x90] sm:$0xff]  ;;  %v3115_v51 = vld [vmem:[%s4580_s1 + $0x18] sm:$0xff] }
   0x9   :  { %194 = vmatpush.msra.mxu3 %v2908_v2  ;;  %2594 = vmatmul.msk.f32.vlgmr.msra.gmra.mxu1 %vm65_vm1, %v3037_v20  ;;  %v3096_v47 = vld [vmem:[%s4580_s1 + $0x8] sm:$0xff]  ;;  %v3108_v50 = vld [vmem:[%s4580_s1 + $0x10] sm:$0xff]  ;;  %v3122_v52 = vld [vmem:[%s4580_s1 + $0x20] sm:$0xff] }
   0xa   :  { %52 = vmatpush.msra.mxu0 %v2953_v9  ;;  %153 = vmatpush.msrb.mxu2 %v21_v10  ;;  %v3129_v53 = vld [vmem:[%s4580_s1 + $0xd8] sm:$0xff]  ;;  %v3136_v56 = vld [vmem:[%s4580_s1 + $0x28] sm:$0xff]  ;;  %v3158_v61 = vld [vmem:[%s4580_s1 + $0xe0] sm:$0xff] }
   0xb   :  { %2592 = vmatmul.msk.f32.vlgmr.msra.gmra.mxu0 %vm26_vm3, %v2965_v11  ;;  %229 = vrot.lane.b32.xlu1 %v2908_v2, %s2869_s24 }
   0xc   :  { %195 = vmatpush.msra.mxu3 %v2926_v5 }
   0xd   :  { %2597 = vmatmul.msk.f32.gmra.mxu2 %vm65_vm1, %v2972_v12  ;;  %225 = vrot.lane.b32.xlu2 %v2938_v6, %s2869_s24 }
   0xe   :  { %196 = vmatpush.msra.mxu3 %v2938_v6 }
  0x10   :  { %197 = vmatpush.msra.mxu3 %v2953_v9 }
  0x11   :  { %2595 = vmatmul.msk.f32.gmra.mxu1 %vm65_vm1, %v3044_v21  ;;  %2606 = vmatmul.msk.f32.vlgmr.msra.gmra.mxu3 %vm26_vm3, %v3129_v53 }
  0x13   :  { %2593 = vmatmul.msk.f32.gmra.mxu0 %vm26_vm3, %v2987_v13 }
  0x15   :  { %2598 = vmatmul.msk.f32.gmra.mxu2 %vm65_vm1, %v2993_v14 }
  0x19   :  { %2607 = vmatmul.msk.f32.gmra.mxu3 %vm26_vm3, %v3158_v61 }
  0x1d   :  { %2600 = vmatmul.msk.f32.vlgmr.msrb.gmra.mxu2 %vm118_vm4, %v3002_v15 }
  0x25   :  { %2601 = vmatmul.msk.f32.gmra.mxu2 %vm118_vm4, %v3009_v16 }
  0x2d   :  { %2602 = vmatmul.msk.f32.gmra.mxu2 %vm118_vm4, %v3016_v17 }
  0x35   :  { %2603 = vmatmul.msk.f32.gmra.mxu2 %vm118_vm4, %v3023_v18 }
  0x3d   :  { %2604 = vmatmul.msk.f32.gmra.mxu2 %vm118_vm4, %v3030_v19 }
  0x5f   :  { %v228_v36 = vpop.permute.xlu2 %227 }
  0x67   :  { %v226_v44 = vpop.permute.xlu2 %225 }
  0x75   :  { %v232_v32 = vpop.permute.xlu1 %231 }
  0x7d   :  { %v230_v40 = vpop.permute.xlu1 %229 }
  0x86   :  { %v98_v35 = vpop.f32.mrf.mxu1 }
  0x88   :  { %v54_v22 = vpop.f32.mrf.mxu0  ;;  %v104_v23 = vpop.f32.mrf.mxu2 }
  0x89   :  { %v3087_v45 = vsel %vm216_vm5, %v104_v23, %v228_v36 }
  0x8e   :  { %v101_v42 = vpop.f32.mrf.mxu1 }
  0x8f   :  { %v3090_v46 = vsel %vm216_vm5, %v101_v42, %v226_v44 }
  0x90   :  { %v57_v24 = vpop.f32.mrf.mxu0  ;;  %v107_v25 = vpop.f32.mrf.mxu2 }
  0x91   :  { %212 = vrot.lane.b32.xlu0 %v57_v24, %s2869_s24  ;;  %v3083_v43 = vsel %vm216_vm5, %v107_v25, %v230_v40 }
  0x98   :  { %v110_v26 = vpop.f32.mrf.mxu2 }
  0x99   :  { %210 = vrot.lane.b32.xlu0 %v54_v22, %s2869_s24  ;;  %v3076_v41 = vsel %vm216_vm5, %v110_v26, %v232_v32 }
  0xa0   :  { %v155_v27 = vpop.f32.mrf.mxu2 }
  0xa1   :  { %223 = vrot.lane.b32.xlu0 %v2953_v9, %s2869_s24 }
  0xa8   :  { %v158_v28 = vpop.f32.mrf.mxu2 }
  0xb0   :  { %v161_v29 = vpop.f32.mrf.mxu2 }
  0xb1   :  { %252 = vrot.lane.b32.xlu0 %v161_v29, %s2869_s24 }
  0xb8   :  { %v164_v30 = vpop.f32.mrf.mxu2 }
  0xb9   :  { %254 = vrot.lane.b32.xlu2 %v164_v30, %s2869_s24  ;;  %274 = vrot.lane.b32.xlu0 %v23_v7, %s2869_s24  ;;  %v3204_v7 = vld [vmem:[%s4580_s1 + $0x48] sm:$0xff] }
  0xba   :  { %4592 = vst [vmem:[#allocation3_spill] sm:$0xff] %v3204_v7 }
  0xc0   :  { %v167_v31 = vpop.f32.mrf.mxu2 }
  0xc1   :  { %248 = vrot.lane.b32.xlu2 %v155_v27, %s2869_s24  ;;  %256 = vrot.lane.b32.xlu1 %v167_v31, %s2869_s24  ;;  %v199_v27 = vpop.f32.mrf.mxu3 }
  0xc9   :  { %250 = vrot.lane.b32.xlu1 %v158_v28, %s2869_s24  ;;  %270 = vrot.lane.b32.xlu2 %v21_v10, %s2869_s24  ;;  %v202_v29 = vpop.f32.mrf.mxu3 }
  0xd1   :  { %272 = vrot.lane.b32.xlu1 %v22_v8, %s2869_s24  ;;  %v3211_v8 = vld [vmem:[%s4580_s1 + $0x50] sm:$0xff]  ;;  %s2870_s24 = smov 16  }
  0xd2   :  { %4593 = vst [vmem:[#allocation4_spill] sm:$0xff] %v3211_v8 }
 0x103   :  { %v213_v33 = vpop.permute.xlu0 %212 }
 0x104   :  { %v3062_v34 = vsel %vm216_vm5, %v2903_v1, %v213_v33 }
 0x105   :  { %304 = vmatpush.msrb.mxu0 %v3062_v34 }
 0x10b   :  { %v211_v37 = vpop.permute.xlu0 %210 }
 0x10c   :  { %v3072_v39 = vsel %vm216_vm5, %v2916_v3, %v211_v37 }
 0x10d   :  { %305 = vmatpush.msrb.mxu0 %v3072_v39 }
 0x10e   :  { %2609 = vmatmul.msk.f32.vlgmr.msrb.gmra.mxu0 %vm65_vm1, %v3068_v38 }
 0x10f   :  { %2613 = vmatpush.msk.msra.mxu0 %vm33_vm0, %v3076_v41 }
 0x111   :  { %392 = vmatpush.msra.mxu0 %v3083_v43 }
 0x113   :  { %393 = vmatpush.msra.mxu0 %v3087_v45  ;;  %v224_v48 = vpop.permute.xlu0 %223  ;;  %v255_v54 = vpop.permute.xlu2 %254 }
 0x114   :  { %v3099_v49 = vsel %vm216_vm5, %v98_v35, %v224_v48  ;;  %v3148_v59 = vsel %vm216_vm5, %v2908_v2, %v255_v54  ;;  %v3176_v2 = vld [vmem:[%s4580_s1 + $0x38] sm:$0xff]  ;;  %v3276_v48 = vld [vmem:[%s4580_s1 + $0x60] sm:$0xff] }
 0x115   :  { %394 = vmatpush.msra.mxu0 %v3090_v46 }
 0x116   :  { %2610 = vmatmul.msk.f32.gmra.mxu0 %vm65_vm1, %v3096_v47 }
 0x117   :  { %395 = vmatpush.msra.mxu0 %v3099_v49 }
 0x11b   :  { %v249_v62 = vpop.permute.xlu2 %248 }
 0x11c   :  { %v3182_v3 = vsel %vm216_vm5, %v2953_v9, %v249_v62  ;;  %v3218_v9 = vld [vmem:[%s4580_s1 + $0x58] sm:$0x1]  ;;  %v3295_v62 = vld [vmem:[%s4580_s1 + $0x70] sm:$0x3] }
 0x11d   :  { %4594 = vst [vmem:[#allocation5_spill] sm:$0xff] %v3218_v9 }
 0x11e   :  { %2614 = vmatmul.msk.f32.vlgmr.msra.gmra.mxu0 %vm26_vm3, %v3108_v50 }
 0x123   :  { %v253_v58 = vpop.permute.xlu0 %252  ;;  %v271_v37 = vpop.permute.xlu2 %270 }
 0x124   :  { %v3153_v60 = vsel %vm216_vm5, %v2926_v5, %v253_v58  ;;  %v3190_v5 = vld [vmem:[%s4580_s1 + $0xe8] sm:$0x3]  ;;  %v3265_v42 = vsel %vm216_vm5, %v199_v27, %v271_v37 }
 0x125   :  { %2608 = vmatmul.msk.f32.gmra.mxu3 %vm26_vm3, %v3190_v5 }
 0x126   :  { %2615 = vmatmul.msk.f32.gmra.mxu0 %vm26_vm3, %v3115_v51 }
 0x12b   :  { %v275_v32 = vpop.permute.xlu0 %274 }
 0x12e   :  { %2616 = vmatmul.msk.f32.gmra.mxu0 %vm26_vm3, %v3122_v52 }
 0x133   :  { %v257_v55 = vpop.permute.xlu1 %256 }
 0x134   :  { %v3140_v57 = vsel %vm216_vm5, %v2898_v0, %v257_v55  ;;  %v3166_v0 = vld [vmem:[%s4580_s1 + $0x30] sm:$0x1]  ;;  %v3285_v55 = vld [vmem:[%s4580_s1 + $0x68] sm:$0xff] }
 0x135   :  { %2625 = vmatpush.msk.msra.mxu2 %vm33_vm0, %v3140_v57 }
 0x136   :  { %2617 = vmatmul.msk.f32.gmra.mxu0 %vm26_vm3, %v3136_v56 }
 0x137   :  { %531 = vmatpush.msra.mxu2 %v3148_v59 }
 0x139   :  { %532 = vmatpush.msra.mxu2 %v3153_v60 }
 0x13b   :  { %v251_v63 = vpop.permute.xlu1 %250 }
 0x13c   :  { %v3170_v1 = vsel %vm216_vm5, %v2938_v6, %v251_v63  ;;  %v3197_v6 = vld [vmem:[%s4580_s1 + $0x40] sm:$0xff] }
 0x13d   :  { %533 = vmatpush.msra.mxu2 %v3170_v1  ;;  %4591 = vst [vmem:[#allocation2_spill] sm:$0xff] %v3197_v6 }
 0x13e   :  { %2618 = vmatmul.msk.f32.gmra.mxu0 %vm26_vm3, %v3166_v0 }
 0x13f   :  { %534 = vmatpush.msra.mxu2 %v3182_v3 }
 0x140   :  { %2626 = vmatmul.msk.f32.vlgmr.msra.gmra.mxu2 %vm26_vm3, %v3176_v2 }
 0x143   :  { %v273_v36 = vpop.permute.xlu1 %272 }
 0x144   :  { %v3262_v40 = vsel %vm216_vm5, %v202_v29, %v273_v36 }
 0x148   :  { %2627 = vmatmul.msk.f32.gmra.mxu2 %vm26_vm3, %v3197_v6 }
 0x150   :  { %2628 = vmatmul.msk.f32.gmra.mxu2 %vm26_vm3, %v3204_v7 }
 0x158   :  { %2629 = vmatmul.msk.f32.gmra.mxu2 %vm26_vm3, %v3211_v8 }
 0x160   :  { %2630 = vmatmul.msk.f32.gmra.mxu2 %vm26_vm3, %v3218_v9 }
 0x18b   :  { %v3222_v10 = vpop.f32.mrf.mxu0 }
 0x193   :  { %v3224_v22 = vpop.f32.mrf.mxu0 }
 0x194   :  { %327 = vmatpush.msrb.mxu3 %v3224_v22 }
 0x196   :  { %328 = vmatpush.msrb.mxu3 %v3222_v10 }
 0x197   :  { %2611 = vmatmul.msk.f32.vlgmr.msrb.gmra.mxu3 %vm65_vm1, %v3068_v38 }
 0x19b   :  { %v3230_v23 = vpop.f32.mrf.mxu0 }
 0x19f   :  { %2612 = vmatmul.msk.f32.gmra.mxu3 %vm65_vm1, %v3096_v47 }
 0x1a3   :  { %v3234_v24 = vpop.f32.mrf.mxu0 }
 0x1a8   :  { %v205_v31 = vpop.f32.mrf.mxu3 }
 0x1a9   :  { %v3252_v35 = vsel %vm216_vm5, %v205_v31, %v275_v32 }
 0x1aa   :  { %2637 = vmatpush.msk.msrb.mxu0 %vm134_vm2, %v3252_v35 }
 0x1ab   :  { %v3236_v25 = vpop.f32.mrf.mxu0 }
 0x1ac   :  { %690 = vmatpush.msrb.mxu0 %v3262_v40 }
 0x1ae   :  { %691 = vmatpush.msrb.mxu0 %v3265_v42 }
 0x1af   :  { %2638 = vmatmul.msk.f32.vlgmr.msrb.gmra.mxu0 %vm118_vm4, %v3276_v48 }
 0x1b3   :  { %v3238_v26 = vpop.f32.mrf.mxu0 }
 0x1b7   :  { %2639 = vmatmul.msk.f32.gmra.mxu0 %vm118_vm4, %v3285_v55 }
 0x1bb   :  { %v3240_v28 = vpop.f32.mrf.mxu0 }
 0x1bc   :  { %2619 = vmatpush.msk.msrb.mxu1 %vm33_vm0, %v3240_v28 }
 0x1be   :  { %427 = vmatpush.msrb.mxu1 %v3238_v26 }
 0x1c0   :  { %428 = vmatpush.msrb.mxu1 %v3236_v25 }
 0x1c2   :  { %429 = vmatpush.msrb.mxu1 %v3234_v24 }
 0x1c3   :  { %v536_v30 = vpop.f32.mrf.mxu2 }
 0x1c4   :  { %590 = vrot.lane.b32.xlu0 %v536_v30, %s2870_s24  ;;  %430 = vmatpush.msrb.mxu1 %v3230_v23 }
 0x1c5   :  { %2620 = vmatmul.msk.f32.vlgmr.msrb.gmra.mxu1 %vm26_vm3, %v3108_v50 }
 0x1c6   :  { %2785 = vmatpush.msk.msra.mxu1 %vm134_vm2, %v3252_v35 }
 0x1c8   :  { %2786 = vmatpush.msra.mxu1 %v3262_v40 }
 0x1ca   :  { %2787 = vmatpush.msra.mxu1 %v3265_v42 }
 0x1cb   :  { %v539_v33 = vpop.f32.mrf.mxu2 }
 0x1cc   :  { %592 = vrot.lane.b32.xlu2 %v539_v33, %s2870_s24 }
 0x1cd   :  { %2621 = vmatmul.msk.f32.gmra.mxu1 %vm26_vm3, %v3115_v51 }
 0x1d3   :  { %v542_v44 = vpop.f32.mrf.mxu2 }
 0x1d5   :  { %2622 = vmatmul.msk.f32.gmra.mxu1 %vm26_vm3, %v3122_v52 }
 0x1db   :  { %v545_v54 = vpop.f32.mrf.mxu2 }
 0x1dd   :  { %2623 = vmatmul.msk.f32.gmra.mxu1 %vm26_vm3, %v3136_v56 }
 0x1e3   :  { %v548_v58 = vpop.f32.mrf.mxu2 }
 0x1e4   :  { %2631 = vmatpush.msk.msra.mxu3 %vm33_vm0, %v548_v58 }
 0x1e5   :  { %2624 = vmatmul.msk.f32.gmra.mxu1 %vm26_vm3, %v3166_v0 }
 0x1e6   :  { %566 = vmatpush.msra.mxu3 %v545_v54 }
 0x1e8   :  { %567 = vmatpush.msra.mxu3 %v542_v44 }
 0x1ea   :  { %568 = vmatpush.msra.mxu3 %v539_v33 }
 0x1ec   :  { %569 = vmatpush.msra.mxu3 %v536_v30 }
 0x1ed   :  { %2632 = vmatmul.msk.f32.vlgmr.msra.gmra.mxu3 %vm26_vm3, %v3176_v2  ;;  %2640 = vmatmul.msk.f32.vlgmr.msra.gmra.mxu1 %vm118_vm4, %v3295_v62 }
 0x1f5   :  { %2633 = vmatmul.msk.f32.gmra.mxu3 %vm26_vm3, %v3197_v6 }
 0x1fd   :  { %2634 = vmatmul.msk.f32.gmra.mxu3 %vm26_vm3, %v3204_v7 }
 0x205   :  { %2635 = vmatmul.msk.f32.gmra.mxu3 %vm26_vm3, %v3211_v8 }
 0x20d   :  { %2636 = vmatmul.msk.f32.gmra.mxu3 %vm26_vm3, %v3218_v9 }
 0x21a   :  { %v330_v31 = vpop.f32.mrf.mxu3 }
 0x222   :  { %v333_v36 = vpop.f32.mrf.mxu3 }
 0x22c   :  { %v3309_v32 = vpop.f32.mrf.mxu0 }
 0x234   :  { %v3315_v6 = vpop.f32.mrf.mxu0 }
 0x242   :  { %v432_v63 = vpop.f32.mrf.mxu1 }
 0x24a   :  { %v435_v27 = vpop.f32.mrf.mxu1 }
 0x252   :  { %v438_v29 = vpop.f32.mrf.mxu1 }
 0x25a   :  { %v441_v30 = vpop.f32.mrf.mxu1 }
 0x262   :  { %v3311_v33 = vpop.f32.mrf.mxu1 }
 0x26a   :  { %v3313_v37 = vpop.f32.mrf.mxu1 }
 0x26b   :  { %2641 = vmatpush.msk.msrb.mxu1 %vm134_vm2, %v3313_v37 }
 0x26d   :  { %719 = vmatpush.msrb.mxu1 %v3315_v6 }
 0x26f   :  { %720 = vmatpush.msrb.mxu1 %v3309_v32 }
 0x270   :  { %v571_v9 = vpop.f32.mrf.mxu3  ;;  %2642 = vmatmul.msk.f32.vlgmr.msrb.gmra.mxu1 %vm118_vm4, %v3276_v48 }
 0x271   :  { %610 = vrot.lane.b32.xlu1 %v571_v9, %s2871_s0 }
 0x278   :  { %v574_v8 = vpop.f32.mrf.mxu3  ;;  %2643 = vmatmul.msk.f32.gmra.mxu1 %vm118_vm4, %v3285_v55 }
 0x279   :  { %594 = vrot.lane.b32.xlu1 %v542_v44, %s2870_s24  ;;  %612 = vrot.lane.b32.xlu0 %v574_v8, %s2871_s0 }
 0x280   :  { %v577_v7 = vpop.f32.mrf.mxu3  ;;  %2644 = vmatmul.msk.f32.gmra.mxu1 %vm118_vm4, %v3295_v62 }
 0x281   :  { %596 = vrot.lane.b32.xlu0 %v545_v54, %s2870_s24  ;;  %614 = vrot.lane.b32.xlu2 %v577_v7, %s2871_s0  ;;  %v593_v7 = vpop.permute.xlu2 %592 }
 0x282   :  { %451 = vrot.lane.b32.xlu1 %v3230_v23, %s2870_s24  ;;  %v591_v23 = vpop.permute.xlu0 %590 }
 0x288   :  { %v580_v9 = vpop.f32.mrf.mxu3 }
 0x289   :  { %598 = vrot.lane.b32.xlu2 %v548_v58, %s2870_s24  ;;  %457 = vrot.lane.b32.xlu0 %v3238_v26, %s2870_s24  ;;  %v626_v58 = vsel %vm65_vm1, %v3170_v1, %v593_v7 }
 0x28a   :  { %616 = vrot.lane.b32.xlu1 %v580_v9, %s2871_s0 }
 0x290   :  { %v583_v8 = vpop.f32.mrf.mxu3 }
 0x291   :  { %618 = vrot.lane.b32.xlu0 %v583_v8, %s2871_s0  ;;  %471 = vrot.lane.b32.xlu2 %v432_v63, %s2871_s0 }
 0x292   :  { %453 = vrot.lane.b32.xlu1 %v3234_v24, %s2870_s24  ;;  %v625_v24 = vsel %vm65_vm1, %v3182_v3, %v591_v23  ;;  %v764_v3 = vld [vmem:[%s4581_s2 + $0x20] sm:$0xff] }
 0x299   :  { %473 = vrot.lane.b32.xlu2 %v435_v27, %s2871_s0 }
 0x29a   :  { %455 = vrot.lane.b32.xlu1 %v3236_v25, %s2870_s24 }
 0x2a1   :  { %475 = vrot.lane.b32.xlu2 %v438_v29, %s2871_s0 }
 0x2a2   :  { %338 = vrot.lane.b32.xlu1 %v3222_v10, %s2870_s24  ;;  %v765_v10 = vld [vmem:[%s4581_s2 + $0x28] sm:$0xff] }
 0x2a3   :  { %800 = vmatpush.msrb.mxu2 %v765_v10 }
 0x2a5   :  { %801 = vmatpush.msrb.mxu2 %v764_v3 }
 0x2a9   :  { %346 = vrot.lane.b32.xlu2 %v330_v31, %s2871_s0  ;;  %v762_v31 = vld [vmem:[%s4581_s2 + $0x10] sm:$0xff] }
 0x2aa   :  { %477 = vrot.lane.b32.xlu1 %v441_v30, %s2871_s0  ;;  %v763_v30 = vld [vmem:[%s4581_s2 + $0x18] sm:$0xff] }
 0x2ab   :  { %802 = vmatpush.msrb.mxu2 %v763_v30 }
 0x2ad   :  { %803 = vmatpush.msrb.mxu2 %v762_v31  ;;  %v775_v31 = vld [vmem:[%s4581_s2 + $0x78] sm:$0xff] }
 0x2b2   :  { %348 = vrot.lane.b32.xlu1 %v333_v36, %s2871_s0  ;;  %v761_v36 = vld [vmem:[%s4581_s2 + $0x8] sm:$0xff] }
 0x2b3   :  { %804 = vmatpush.msrb.mxu2 %v761_v36  ;;  %v773_v36 = vld [vmem:[%s4581_s2 + $0x68] sm:$0xff] }
 0x2db   :  { %v615_v26 = vpop.permute.xlu2 %614 }
 0x2e3   :  { %v611_v44 = vpop.permute.xlu1 %610  ;;  %v599_v54 = vpop.permute.xlu2 %598 }
 0x2e4   :  { %v630_v25 = vsel %vm354_vm6, %v625_v24, %v611_v44 }
 0x2e5   :  { %640 = vrot.lane.b32.xlu0 %v630_v25, %s2872_s11 }
 0x2eb   :  { %v613_v63 = vpop.permute.xlu0 %612  ;;  %v595_v27 = vpop.permute.xlu1 %594 }
 0x2ec   :  { %v631_v29 = vsel %vm354_vm6, %v626_v58, %v613_v63  ;;  %v627_v1 = vsel %vm65_vm1, %v3153_v60, %v595_v27  ;;  %v472_v23 = vpop.permute.xlu2 %471  ;;  %v760_v60 = vld [vmem:[%s4581_s2] sm:$0xff]  ;;  %v629_v27 = vsel %vm65_vm1, %v3140_v57, %v599_v54 }
 0x2ed   :  { %642 = vrot.lane.b32.xlu0 %v631_v29, %s2872_s11  ;;  %v632_v7 = vsel %vm354_vm6, %v627_v1, %v615_v26  ;;  %805 = vmatpush.msrb.mxu2 %v760_v60  ;;  %v722_v58 = vpop.f32.mrf.mxu1  ;;  %v776_v57 = vld [vmem:[%s4581_s2 + $0x80] sm:$0xff] }
 0x2f3   :  { %v597_v9 = vpop.permute.xlu0 %596 }
 0x2f4   :  { %v452_v8 = vpop.permute.xlu1 %451  ;;  %v628_v26 = vsel %vm65_vm1, %v3148_v59, %v597_v9  ;;  %v474_v63 = vpop.permute.xlu2 %473  ;;  %v777_v59 = vld [vmem:[%s4581_s2 + $0x88] sm:$0xff] }
 0x2f5   :  { %v486_v24 = vsel %vm65_vm1, %v3099_v49, %v452_v8  ;;  %644 = vrot.lane.b32.xlu0 %v632_v7, %s2872_s11  ;;  %839 = vmatpush.msrb.mxu3 %v777_v59  ;;  %v772_v8 = vld [vmem:[%s4581_s2 + $0x60] sm:$0xff] }
 0x2f6   :  { %v3384_v44 = vsel %vm354_vm6, %v486_v24, %v472_v23  ;;  %v771_v23 = vld [vmem:[%s4581_s2 + $0x58] sm:$0xff]  ;;  %v769_v24 = vld [vmem:[%s4581_s2 + $0x48] sm:$0xff] }
 0x2f7   :  { %840 = vmatpush.msrb.mxu3 %v776_v57  ;;  %v778_v57 = vld [vmem:[%s4581_s2 + $0x90] sm:$0xff] }
 0x2f9   :  { %841 = vmatpush.msrb.mxu3 %v775_v31 }
 0x2fb   :  { %v3386_v25 = vpop.permute.xlu0 %457 }
 0x2fc   :  { %v617_v10 = vpop.permute.xlu1 %616  ;;  %v476_v1 = vpop.permute.xlu2 %475 }
 0x2fd   :  { %340 = vrot.lane.b32.xlu0 %v3224_v22, %s2870_s24  ;;  %v633_v49 = vsel %vm354_vm6, %v628_v26, %v617_v10  ;;  %v768_v10 = vld [vmem:[%s4581_s2 + $0x40] sm:$0xff] }
 0x2fe   :  { %646 = vrot.lane.b32.xlu2 %v633_v49, %s2872_s11 }
 0x303   :  { %v619_v29 = vpop.permute.xlu0 %618 }
 0x304   :  { %v454_v3 = vpop.permute.xlu1 %453  ;;  %v634_v30 = vsel %vm354_vm6, %v629_v27, %v619_v29  ;;  %v782_v29 = vld [vmem:[%s4581_s2 + $0xb0] sm:$0xff] }
 0x305   :  { %v487_v22 = vsel %vm65_vm1, %v3090_v46, %v454_v3  ;;  %648 = vrot.lane.b32.xlu1 %v634_v30, %s2872_s11  ;;  %479 = vrot.lane.b32.xlu0 %v3311_v33, %s2871_s0  ;;  %v725_v46 = vpop.f32.mrf.mxu1  ;;  %v774_v33 = vld [vmem:[%s4581_s2 + $0x70] sm:$0xff]  ;;  %v781_v3 = vld [vmem:[%s4581_s2 + $0xa8] sm:$0xff] }
 0x306   :  { %459 = vrot.lane.b32.xlu2 %v3240_v28, %s2870_s24  ;;  %v492_v54 = vsel %vm354_vm6, %v487_v22, %v474_v63  ;;  %842 = vmatpush.msrb.mxu3 %v774_v33  ;;  %v780_v30 = vld [vmem:[%s4581_s2 + $0xa0] sm:$0xff] }
 0x308   :  { %843 = vmatpush.msrb.mxu3 %v773_v36  ;;  %v489_v36 = vsel %vm65_vm1, %v3083_v43, %v3386_v25 }
 0x30a   :  { %844 = vmatpush.msrb.mxu3 %v772_v8 }
 0x30c   :  { %v456_v28 = vpop.permute.xlu1 %455  ;;  %845 = vmatpush.msrb.mxu3 %v771_v23 }
 0x30d   :  { %v488_v9 = vsel %vm65_vm1, %v3087_v45, %v456_v28  ;;  %735 = vrot.lane.b32.xlu1 %v3315_v6, %s2870_s24  ;;  %745 = vrot.lane.b32.xlu0 %v722_v58, %s2871_s0  ;;  %v770_v45 = vld [vmem:[%s4581_s2 + $0x50] sm:$0xff]  ;;  %v728_v6 = vpop.f32.mrf.mxu1  ;;  %v783_v58 = vld [vmem:[%s4581_s2 + $0xb8] sm:$0xff] }
 0x30e   :  { %733 = vrot.lane.b32.xlu2 %v3309_v32, %s2870_s24  ;;  %v493_v7 = vsel %vm354_vm6, %v488_v9, %v476_v1  ;;  %846 = vmatpush.msrb.mxu3 %v770_v45  ;;  %v347_v32 = vpop.permute.xlu2 %346 }
 0x30f   :  { %901 = vmatpush.msra.mxu2 %v783_v58 }
 0x310   :  { %847 = vmatpush.msrb.mxu3 %v769_v24 }
 0x311   :  { %902 = vmatpush.msra.mxu2 %v782_v29 }
 0x312   :  { %848 = vmatpush.msrb.mxu3 %v768_v10 }
 0x313   :  { %903 = vmatpush.msra.mxu2 %v781_v3 }
 0x314   :  { %v339_v60 = vpop.permute.xlu1 %338 }
 0x315   :  { %v352_v26 = vsel %vm65_vm1, %v3072_v39, %v339_v60  ;;  %737 = vrot.lane.b32.xlu0 %v3313_v37, %s2870_s24  ;;  %749 = vrot.lane.b32.xlu1 %v728_v6, %s2871_s0  ;;  %v767_v39 = vld [vmem:[%s4581_s2 + $0x38] sm:$0xff]  ;;  %v766_v37 = vld [vmem:[%s4581_s2 + $0x30] sm:$0xff] }
 0x316   :  { %v355_v49 = vsel %vm354_vm6, %v352_v26, %v347_v32  ;;  %747 = vrot.lane.b32.xlu2 %v725_v46, %s2871_s0  ;;  %849 = vmatpush.msrb.mxu3 %v767_v39 }
 0x317   :  { %2645 = vmatmul.msk.f32.vlgmr.msrb.gmra.mxu2 %vm655_vm7, %v355_v49 }
 0x318   :  { %850 = vmatpush.msrb.mxu3 %v766_v37  ;;  %904 = vmatpush.msra.mxu2 %v780_v30 }
 0x31c   :  { %v478_v31 = vpop.permute.xlu1 %477 }
 0x324   :  { %v349_v28 = vpop.permute.xlu1 %348 }
 0x357   :  { %v641_v63 = vpop.permute.xlu0 %640 }
 0x358   :  { %v656_v27 = vsel %vm655_vm7, %v3384_v44, %v641_v63  ;;  %v779_v44 = vld [vmem:[%s4581_s2 + $0x98] sm:$0xff]  ;;  %v647_v33 = vpop.permute.xlu2 %646 }
 0x359   :  { %2647 = vmatmul.msk.f32.vlgmr.msrb.gmra.mxu3 %vm819_vm8, %v656_v27  ;;  %905 = vmatpush.msra.mxu2 %v779_v44 }
 0x35b   :  { %906 = vmatpush.msra.mxu2 %v778_v57 }
 0x35f   :  { %v643_v59 = vpop.permute.xlu0 %642 }
 0x360   :  { %v657_v22 = vsel %vm655_vm7, %v492_v54, %v643_v59  ;;  %v494_v54 = vsel %vm354_vm6, %v489_v36, %v478_v31 }
 0x361   :  { %2648 = vmatmul.msk.f32.gmra.mxu3 %vm819_vm8, %v657_v22  ;;  %v659_v23 = vsel %vm655_vm7, %v494_v54, %v647_v33 }
 0x367   :  { %v645_v46 = vpop.permute.xlu0 %644 }
 0x368   :  { %v658_v1 = vsel %vm655_vm7, %v493_v7, %v645_v46  ;;  %v460_v7 = vpop.permute.xlu2 %459 }
 0x369   :  { %2649 = vmatmul.msk.f32.gmra.mxu3 %vm819_vm8, %v658_v1  ;;  %v490_v6 = vsel %vm65_vm1, %v3076_v41, %v460_v7 }
 0x36f   :  { %v341_v9 = vpop.permute.xlu0 %340 }
 0x370   :  { %v353_v8 = vsel %vm65_vm1, %v3062_v34, %v341_v9  ;;  %v734_v34 = vpop.permute.xlu2 %733 }
 0x371   :  { %2650 = vmatmul.msk.f32.gmra.mxu3 %vm819_vm8, %v659_v23  ;;  %v356_v45 = vsel %vm354_vm6, %v353_v8, %v349_v28  ;;  %v754_v32 = vsel %vm65_vm1, %v3265_v42, %v734_v34 }
 0x372   :  { %2646 = vmatmul.msk.f32.gmra.mxu2 %vm655_vm7, %v356_v45 }
 0x377   :  { %v649_v43 = vpop.permute.xlu1 %648  ;;  %v480_v25 = vpop.permute.xlu0 %479 }
 0x378   :  { %v495_v24 = vsel %vm354_vm6, %v490_v6, %v480_v25  ;;  %v748_v39 = vpop.permute.xlu2 %747 }
 0x379   :  { %v660_v60 = vsel %vm655_vm7, %v495_v24, %v649_v43 }
 0x37a   :  { %2651 = vmatmul.msk.f32.gmra.mxu3 %vm819_vm8, %v660_v60 }
 0x37f   :  { %v746_v26 = vpop.permute.xlu0 %745  ;;  %v736_v49 = vpop.permute.xlu1 %735 }
 0x380   :  { %v757_v10 = vsel %vm354_vm6, %v754_v32, %v746_v26  ;;  %v755_v41 = vsel %vm65_vm1, %v3262_v40, %v736_v49 }
 0x381   :  { %2652 = vmatmul.msk.f32.vlgmr.msra.gmra.mxu2 %vm655_vm7, %v757_v10  ;;  %v758_v37 = vsel %vm354_vm6, %v755_v41, %v748_v39 }
 0x387   :  { %v738_v58 = vpop.permute.xlu0 %737  ;;  %v750_v27 = vpop.permute.xlu1 %749 }
 0x388   :  { %v756_v63 = vsel %vm65_vm1, %v3252_v35, %v738_v58 }
 0x389   :  { %2653 = vmatmul.msk.f32.gmra.mxu2 %vm655_vm7, %v758_v37  ;;  %v759_v42 = vsel %vm354_vm6, %v756_v63, %v750_v27 }
 0x391   :  { %2654 = vmatmul.msk.f32.gmra.mxu2 %vm655_vm7, %v759_v42 }
 0x39a   :  { %v807_v57 = vpop.f32.mrf.mxu2 }
 0x39b   :  { %v815_v36 = vmul.f32 0.01, %v807_v57  ;;  %vm813_vm14 = vcmp.gt.f32.partialorder %v807_v57, 0.0 }
 0x39d   :  { %v3526_v45 = vsel %vm813_vm14, %v807_v57, %v815_v36 }
 0x3dc   :  { %v852_v29 = vpop.f32.mrf.mxu3 }
 0x3dd   :  { %v872_v3 = vmul.f32 0.01, %v852_v29  ;;  %vm867_vm9 = vcmp.gt.f32.partialorder %v852_v29, 0.0 }
 0x3df   :  { %v3509_v44 = vsel %vm867_vm9, %v852_v29, %v872_v3 }
 0x3e4   :  { %v855_v30 = vpop.f32.mrf.mxu3 }
 0x3e5   :  { %vm868_vm10 = vcmp.gt.f32.partialorder %v855_v30, 0.0  ;;  %v873_v40 = vmul.f32 0.01, %v855_v30 }
 0x3e7   :  { %v3511_v59 = vsel %vm868_vm10, %v855_v30, %v873_v40 }
 0x3e8   :  { %v2799_v22 = vpack.i.bf16 %v3509_v44, %v3511_v59 }
 0x3ea   :  { %2800 = vrot.lane.b32.xlu1 %v2799_v22, %s2870_s24 }
 0x3ec   :  { %v858_v35 = vpop.f32.mrf.mxu3 }
 0x3ed   :  { %v874_v31 = vmul.f32 0.01, %v858_v35  ;;  %vm869_vm11 = vcmp.gt.f32.partialorder %v858_v35, 0.0 }
 0x3ef   :  { %v3516_v28 = vsel %vm869_vm11, %v858_v35, %v874_v31  ;;  %vm1182_vm11 = vcmask 523264  }
 0x3f4   :  { %v861_v46 = vpop.f32.mrf.mxu3 }
 0x3f5   :  { %vm870_vm12 = vcmp.gt.f32.partialorder %v861_v46, 0.0  ;;  %v875_v33 = vmul.f32 0.01, %v861_v46  ;;  %v810_v1 = vpop.f32.mrf.mxu2 }
 0x3f6   :  { %v816_v54 = vmul.f32 0.01, %v810_v1  ;;  %vm814_vm13 = vcmp.gt.f32.partialorder %v810_v1, 0.0 }
 0x3f7   :  { %v3518_v9 = vsel %vm870_vm12, %v861_v46, %v875_v33 }
 0x3f8   :  { %v3520_v8 = vsel %vm814_vm13, %v810_v1, %v816_v54  ;;  %v2794_v23 = vpack.i.bf16 %v3516_v28, %v3518_v9 }
 0x3f9   :  { %966 = vmatpush.msra.mxu1 %v3520_v8 }
 0x3fa   :  { %2795 = vrot.lane.b32.xlu0 %v2794_v23, %s2870_s24 }
 0x3fb   :  { %967 = vmatpush.msra.mxu1 %v3526_v45 }
 0x3fc   :  { %2658 = vmatmul.msk.f32.vlgmr.msra.gmra.mxu1 %vm65_vm1, %v3037_v20 }
 0x3fd   :  { %v864_v7 = vpop.f32.mrf.mxu3 }
 0x3fe   :  { %vm871_vm15 = vcmp.gt.f32.partialorder %v864_v7, 0.0  ;;  %v876_v6 = vmul.f32 0.01, %v864_v7 }
 0x400   :  { %v3531_v43 = vsel %vm871_vm15, %v864_v7, %v876_v6 }
 0x401   :  { %2655 = vmatpush.msk.msra.mxu0 %vm33_vm0, %v3531_v43  ;;  %2669 = vmatpush.msk.msrb.mxu2 %vm33_vm0, %v3531_v43 }
 0x402   :  { %1067 = vrot.lane.b32.xlu2 %v3531_v43, %s2870_s24 }
 0x403   :  { %941 = vmatpush.msra.mxu0 %v3518_v9  ;;  %1031 = vmatpush.msrb.mxu2 %v3518_v9 }
 0x404   :  { %v908_v25 = vpop.f32.mrf.mxu2  ;;  %2659 = vmatmul.msk.f32.gmra.mxu1 %vm65_vm1, %v3044_v21 }
 0x405   :  { %942 = vmatpush.msra.mxu0 %v3516_v28  ;;  %1032 = vmatpush.msrb.mxu2 %v3516_v28  ;;  %v920_v60 = vmul.f32 0.01, %v908_v25  ;;  %vm917_vm10 = vcmp.gt.f32.partialorder %v908_v25, 0.0 }
 0x407   :  { %943 = vmatpush.msra.mxu0 %v3511_v59  ;;  %1033 = vmatpush.msrb.mxu2 %v3511_v59 }
 0x409   :  { %944 = vmatpush.msra.mxu0 %v3509_v44  ;;  %1034 = vmatpush.msrb.mxu2 %v3509_v44 }
 0x40a   :  { %2656 = vmatmul.msk.f32.vlgmr.msra.gmra.mxu0 %vm26_vm3, %v2965_v11  ;;  %2670 = vmatmul.msk.f32.vlgmr.msrb.gmra.mxu2 %vm26_vm3, %v3129_v53 }
 0x40c   :  { %v911_v20 = vpop.f32.mrf.mxu2  ;;  %2660 = vmatmul.msk.f32.gmra.mxu1 %vm65_vm1, %v2921_v4 }
 0x40d   :  { %v921_v24 = vmul.f32 0.01, %v911_v20  ;;  %vm918_vm9 = vcmp.gt.f32.partialorder %v911_v20, 0.0 }
 0x40f   :  { %v924_v4 = vsel %vm918_vm9, %v911_v20, %v921_v24 }
 0x412   :  { %2657 = vmatmul.msk.f32.gmra.mxu0 %vm26_vm3, %v2987_v13  ;;  %2671 = vmatmul.msk.f32.gmra.mxu2 %vm26_vm3, %v3158_v61  ;;  %v923_v13 = vsel %vm917_vm10, %v908_v25, %v920_v60 }
 0x414   :  { %v914_v21 = vpop.f32.mrf.mxu2  ;;  %2661 = vmatmul.msk.f32.gmra.mxu1 %vm65_vm1, %v2972_v12 }
 0x415   :  { %vm919_vm7 = vcmp.gt.f32.partialorder %v914_v21, 0.0  ;;  %v922_v11 = vmul.f32 0.01, %v914_v21 }
 0x417   :  { %v925_v53 = vsel %vm919_vm7, %v914_v21, %v922_v11 }
 0x418   :  { %2663 = vmatpush.msk.msrb.mxu0 %vm134_vm2, %v925_v53 }
 0x41a   :  { %1001 = vmatpush.msrb.mxu0 %v924_v4  ;;  %2672 = vmatmul.msk.f32.gmra.mxu2 %vm26_vm3, %v3190_v5 }
 0x41c   :  { %2662 = vmatmul.msk.f32.gmra.mxu1 %vm65_vm1, %v2993_v14  ;;  %1002 = vmatpush.msrb.mxu0 %v923_v13 }
 0x41d   :  { %2664 = vmatmul.msk.f32.vlgmr.msrb.gmra.mxu0 %vm118_vm4, %v3002_v15 }
 0x425   :  { %2665 = vmatmul.msk.f32.gmra.mxu0 %vm118_vm4, %v3009_v16 }
 0x42d   :  { %2666 = vmatmul.msk.f32.gmra.mxu0 %vm118_vm4, %v3016_v17 }
 0x435   :  { %2667 = vmatmul.msk.f32.gmra.mxu0 %vm118_vm4, %v3023_v18 }
 0x43d   :  { %2668 = vmatmul.msk.f32.gmra.mxu0 %vm118_vm4, %v3030_v19 }
 0x45c   :  { %v1068_v15 = vpop.permute.xlu2 %1067  ;;  %v2801_v41 = vpop.permute.xlu1 %2800 }
 0x45d   :  { %v2802_v39 = vunpack.i.l.bf16 %v2801_v41  ;;  %v2803_v58 = vunpack.i.h.bf16 %v2801_v41 }
 0x46c   :  { %v2796_v26 = vpop.permute.xlu0 %2795 }
 0x46d   :  { %v2797_v49 = vunpack.i.l.bf16 %v2796_v26  ;;  %v2798_v18 = vunpack.i.h.bf16 %v2796_v26 }
 0x479   :  { %v969_v12 = vpop.f32.mrf.mxu1 }
 0x47a   :  { %v3594_v42 = vsel %vm65_vm1, %v969_v12, %v2803_v58 }
 0x481   :  { %v972_v61 = vpop.f32.mrf.mxu1 }
 0x482   :  { %v3590_v63 = vsel %vm65_vm1, %v972_v61, %v2802_v39  ;;  %v4598_v61 = vld [vmem:[#allocation5_spill] sm:$0xff] }
 0x487   :  { %v946_v5 = vpop.f32.mrf.mxu0 }
 0x489   :  { %v975_v14 = vpop.f32.mrf.mxu1 }
 0x48a   :  { %v3586_v37 = vsel %vm65_vm1, %v975_v14, %v2798_v18 }
 0x48d   :  { %v1036_v31 = vpop.f32.mrf.mxu2 }
 0x48f   :  { %v949_v34 = vpop.f32.mrf.mxu0 }
 0x491   :  { %v978_v32 = vpop.f32.mrf.mxu1 }
 0x492   :  { %v3582_v19 = vsel %vm65_vm1, %v978_v32, %v2797_v49 }
 0x499   :  { %v981_v10 = vpop.f32.mrf.mxu1 }
 0x49a   :  { %v3577_v16 = vsel %vm65_vm1, %v981_v10, %v1068_v15  ;;  %v1004_v17 = vpop.f32.mrf.mxu0 }
 0x49b   :  { %2677 = vmatpush.msk.msrb.mxu1 %vm33_vm0, %v3577_v16 }
 0x49d   :  { %1200 = vmatpush.msrb.mxu1 %v3582_v19 }
 0x49f   :  { %1201 = vmatpush.msrb.mxu1 %v3586_v37 }
 0x4a1   :  { %1202 = vmatpush.msrb.mxu1 %v3590_v63 }
 0x4a2   :  { %v1007_v27 = vpop.f32.mrf.mxu0 }
 0x4a3   :  { %1203 = vmatpush.msrb.mxu1 %v3594_v42 }
 0x4a4   :  { %2678 = vmatmul.msk.f32.vlgmr.msrb.gmra.mxu1 %vm26_vm3, %v3108_v50 }
 0x4aa   :  { %v1010_v29 = vpop.f32.mrf.mxu0 }
 0x4ab   :  { %1088 = vrot.lane.b32.xlu1 %v1010_v29, %s2870_s24 }
 0x4ac   :  { %2679 = vmatmul.msk.f32.gmra.mxu1 %vm26_vm3, %v3115_v51 }
 0x4b2   :  { %v1013_v3 = vpop.f32.mrf.mxu0 }
 0x4b3   :  { %1049 = vrot.lane.b32.xlu1 %v949_v34, %s2870_s24  ;;  %1090 = vrot.lane.b32.xlu0 %v1013_v3, %s2870_s24 }
 0x4b4   :  { %2680 = vmatmul.msk.f32.gmra.mxu1 %vm26_vm3, %v3122_v52 }
 0x4ba   :  { %v1016_v30 = vpop.f32.mrf.mxu0 }
 0x4bb   :  { %1108 = vrot.lane.b32.xlu1 %v924_v4, %s2870_s24  ;;  %1084 = vrot.lane.b32.xlu0 %v1004_v17, %s2870_s24 }
 0x4bc   :  { %1092 = vrot.lane.b32.xlu2 %v1016_v30, %s2870_s24  ;;  %2681 = vmatmul.msk.f32.gmra.mxu1 %vm26_vm3, %v3136_v56  ;;  %v1582_v30 = vld [vmem:[%s4581_s2 + $0x2f8] sm:$0xff] }
 0x4c3   :  { %1110 = vrot.lane.b32.xlu0 %v925_v53, %s2870_s24  ;;  %v4596_v53 = vld [vmem:[#allocation3_spill] sm:$0xff] }
 0x4c4   :  { %1086 = vrot.lane.b32.xlu2 %v1007_v27, %s2870_s24  ;;  %2682 = vmatmul.msk.f32.gmra.mxu1 %vm26_vm3, %v3166_v0 }
 0x4cc   :  { %1047 = vrot.lane.b32.xlu2 %v946_v5, %s2870_s24 }
 0x4d4   :  { %1106 = vrot.lane.b32.xlu2 %v923_v13, %s2870_s24  ;;  %v4597_v13 = vld [vmem:[#allocation4_spill] sm:$0xff] }
 0x516   :  { %v1093_v40 = vpop.permute.xlu2 %1092 }
 0x517   :  { %v3619_v22 = vsel %vm65_vm1, %v3531_v43, %v1093_v40  ;;  %v1581_v40 = vld [vmem:[%s4581_s2 + $0x2f0] sm:$0xff] }
 0x518   :  { %2689 = vmatpush.msk.msra.mxu0 %vm33_vm0, %v3619_v22 }
 0x51d   :  { %v1089_v35 = vpop.permute.xlu1 %1088 }
 0x51e   :  { %v1087_v57 = vpop.permute.xlu2 %1086  ;;  %v3639_v7 = vsel %vm65_vm1, %v3516_v28, %v1089_v35  ;;  %v1580_v35 = vld [vmem:[%s4581_s2 + $0x2e8] sm:$0xff] }
 0x521   :  { %v3657_v28 = vpop.f32.mrf.mxu1 }
 0x525   :  { %v1091_v46 = vpop.permute.xlu0 %1090  ;;  %v1050_v33 = vpop.permute.xlu1 %1049 }
 0x526   :  { %v1048_v1 = vpop.permute.xlu2 %1047  ;;  %v3625_v36 = vsel %vm65_vm1, %v3520_v8, %v1050_v33  ;;  %v3629_v54 = vsel %vm65_vm1, %v3518_v9, %v1091_v46  ;;  %v1039_v8 = vpop.f32.mrf.mxu2  ;;  %v3645_v9 = vsel %vm65_vm1, %v3511_v59, %v1087_v57  ;;  %v1579_v57 = vld [vmem:[%s4581_s2 + $0x2e0] sm:$0xff]  ;;  %v1577_v46 = vld [vmem:[%s4581_s2 + $0x2d0] sm:$0xff]  ;;  %v1576_v33 = vld [vmem:[%s4581_s2 + $0x2c8] sm:$0xff] }
 0x527   :  { %1132 = vmatpush.msra.mxu3 %v3625_v36  ;;  %1319 = vmatpush.msra.mxu0 %v3629_v54  ;;  %v3635_v23 = vsel %vm65_vm1, %v3526_v45, %v1048_v1  ;;  %v1575_v1 = vld [vmem:[%s4581_s2 + $0x2c0] sm:$0xff] }
 0x529   :  { %1133 = vmatpush.msra.mxu3 %v3635_v23  ;;  %1320 = vmatpush.msra.mxu0 %v3639_v7  ;;  %v3671_v11 = vpop.f32.mrf.mxu1 }
 0x52a   :  { %2673 = vmatmul.msk.f32.vlgmr.msra.gmra.mxu3 %vm65_vm1, %v3068_v38  ;;  %v2804_v29 = vpack.i.bf16 %v3671_v11, %v3657_v28 }
 0x52b   :  { %1321 = vmatpush.msra.mxu0 %v3645_v9 }
 0x52d   :  { %v1085_v45 = vpop.permute.xlu0 %1084  ;;  %v1109_v43 = vpop.permute.xlu1 %1108 }
 0x52e   :  { %v3652_v6 = vsel %vm65_vm1, %v3509_v44, %v1085_v45  ;;  %v1042_v59 = vpop.f32.mrf.mxu2  ;;  %v1107_v21 = vpop.permute.xlu2 %1106  ;;  %v4595_v44 = vld [vmem:[#allocation2_spill] sm:$0xff]  ;;  %v3669_v24 = vsel %vm65_vm1, %v1039_v8, %v1109_v43  ;;  %v1574_v8 = vld [vmem:[%s4581_s2 + $0x2b8] sm:$0xff]  ;;  %v1573_v45 = vld [vmem:[%s4581_s2 + $0x2b0] sm:$0xff] }
 0x52f   :  { %1322 = vmatpush.msra.mxu0 %v3652_v6  ;;  %v3675_v60 = vsel %vm65_vm1, %v1036_v31, %v1107_v21  ;;  %v1578_v31 = vld [vmem:[%s4581_s2 + $0x2d8] sm:$0xff] }
 0x530   :  { %2690 = vmatmul.msk.f32.vlgmr.msra.gmra.mxu0 %vm26_vm3, %v3176_v2 }
 0x531   :  { %v3682_v4 = vpop.f32.mrf.mxu1 }
 0x532   :  { %2674 = vmatmul.msk.f32.gmra.mxu3 %vm65_vm1, %v3096_v47 }
 0x535   :  { %v1111_v25 = vpop.permute.xlu0 %1110 }
 0x536   :  { %v3662_v20 = vsel %vm65_vm1, %v1042_v59, %v1111_v25  ;;  %v1571_v59 = vld [vmem:[%s4581_s2 + $0x2a0] sm:$0xff] }
 0x537   :  { %2701 = vmatpush.msk.msra.mxu1 %vm134_vm2, %v3662_v20 }
 0x538   :  { %2691 = vmatmul.msk.f32.gmra.mxu0 %vm26_vm3, %v4595_v44 }
 0x539   :  { %1465 = vmatpush.msra.mxu1 %v3669_v24  ;;  %v3688_v12 = vpop.f32.mrf.mxu1 }
 0x53b   :  { %1466 = vmatpush.msra.mxu1 %v3675_v60 }
 0x53c   :  { %2702 = vmatmul.msk.f32.vlgmr.msra.gmra.mxu1 %vm118_vm4, %v3276_v48 }
 0x540   :  { %2692 = vmatmul.msk.f32.gmra.mxu0 %vm26_vm3, %v4596_v53 }
 0x541   :  { %v3694_v5 = vpop.f32.mrf.mxu1 }
 0x542   :  { %2683 = vmatpush.msk.msra.mxu2 %vm33_vm0, %v3694_v5 }
 0x544   :  { %2703 = vmatmul.msk.f32.gmra.mxu1 %vm118_vm4, %v3285_v55  ;;  %1235 = vmatpush.msra.mxu2 %v3688_v12 }
 0x546   :  { %1236 = vmatpush.msra.mxu2 %v3682_v4 }
 0x548   :  { %2693 = vmatmul.msk.f32.gmra.mxu0 %vm26_vm3, %v4597_v13  ;;  %1237 = vmatpush.msra.mxu2 %v3671_v11 }
 0x54a   :  { %1238 = vmatpush.msra.mxu2 %v3657_v28  ;;  %v1572_v28 = vld [vmem:[%s4581_s2 + $0x2a8] sm:$0xff] }
 0x54b   :  { %2684 = vmatmul.msk.f32.vlgmr.msra.gmra.mxu2 %vm26_vm3, %v3108_v50 }
 0x54c   :  { %2704 = vmatmul.msk.f32.gmra.mxu1 %vm118_vm4, %v3295_v62 }
 0x550   :  { %2694 = vmatmul.msk.f32.gmra.mxu0 %vm26_vm3, %v4598_v61 }
 0x553   :  { %2685 = vmatmul.msk.f32.gmra.mxu2 %vm26_vm3, %v3115_v51 }
 0x55b   :  { %2686 = vmatmul.msk.f32.gmra.mxu2 %vm26_vm3, %v3122_v52 }
 0x563   :  { %2687 = vmatmul.msk.f32.gmra.mxu2 %vm26_vm3, %v3136_v56 }
 0x56b   :  { %2688 = vmatmul.msk.f32.gmra.mxu2 %vm26_vm3, %v3166_v0 }
 0x5ad   :  { %v1324_v14 = vpop.f32.mrf.mxu0  ;;  %v3712_v34 = vpop.f32.mrf.mxu3 }
 0x5ae   :  { %1378 = vrot.lane.b32.xlu0 %v1324_v14, %s2871_s0 }
 0x5b5   :  { %v1327_v32 = vpop.f32.mrf.mxu0  ;;  %v3715_v26 = vpop.f32.mrf.mxu3 }
 0x5b6   :  { %1380 = vrot.lane.b32.xlu1 %v1327_v32, %s2871_s0  ;;  %1155 = vmatpush.msrb.mxu3 %v3715_v26 }
 0x5b8   :  { %1156 = vmatpush.msrb.mxu3 %v3712_v34 }
 0x5b9   :  { %v1468_v50 = vpop.f32.mrf.mxu1  ;;  %2675 = vmatmul.msk.f32.vlgmr.msrb.gmra.mxu3 %vm65_vm1, %v3068_v38 }
 0x5ba   :  { %1508 = vrot.lane.b32.xlu2 %v1468_v50, %s2871_s0 }
 0x5bd   :  { %v1330_v51 = vpop.f32.mrf.mxu0 }
 0x5c1   :  { %v1471_v52 = vpop.f32.mrf.mxu1  ;;  %2676 = vmatmul.msk.f32.gmra.mxu3 %vm65_vm1, %v3096_v47 }
 0x5c5   :  { %v1333_v56 = vpop.f32.mrf.mxu0 }
 0x5c9   :  { %v1474_v0 = vpop.f32.mrf.mxu1 }
 0x5ca   :  { %2705 = vmatpush.msk.msrb.mxu2 %vm134_vm2, %v1474_v0 }
 0x5cc   :  { %1494 = vmatpush.msrb.mxu2 %v1471_v52 }
 0x5cd   :  { %v1336_v15 = vpop.f32.mrf.mxu0 }
 0x5ce   :  { %2695 = vmatpush.msk.msra.mxu3 %vm33_vm0, %v1336_v15  ;;  %1495 = vmatpush.msrb.mxu2 %v1468_v50  ;;  %v1240_v38 = vpop.f32.mrf.mxu2 }
 0x5cf   :  { %2706 = vmatmul.msk.f32.vlgmr.msrb.gmra.mxu2 %vm118_vm4, %v3276_v48 }
 0x5d0   :  { %1354 = vmatpush.msra.mxu3 %v1333_v56  ;;  %1720 = vmatpush.msra.mxu2 %v1582_v30  ;;  %v1553_v30 = vld [vmem:[%s4581_s2 + $0x210] sm:$0xff] }
 0x5d2   :  { %1355 = vmatpush.msra.mxu3 %v1330_v51  ;;  %1721 = vmatpush.msra.mxu2 %v1581_v40  ;;  %v1552_v40 = vld [vmem:[%s4581_s2 + $0x208] sm:$0xff] }
 0x5d4   :  { %1356 = vmatpush.msra.mxu3 %v1327_v32  ;;  %1722 = vmatpush.msra.mxu2 %v1580_v35  ;;  %v1551_v35 = vld [vmem:[%s4581_s2 + $0x200] sm:$0xff] }
 0x5d6   :  { %1357 = vmatpush.msra.mxu3 %v1324_v14  ;;  %v1243_v47 = vpop.f32.mrf.mxu2  ;;  %1723 = vmatpush.msra.mxu2 %v1579_v57  ;;  %v1566_v57 = vld [vmem:[%s4581_s2 + $0x278] sm:$0xff] }
 0x5d7   :  { %2696 = vmatmul.msk.f32.vlgmr.msra.gmra.mxu3 %vm26_vm3, %v3176_v2  ;;  %2707 = vmatmul.msk.f32.gmra.mxu2 %vm118_vm4, %v3285_v55 }
 0x5d8   :  { %1724 = vmatpush.msra.mxu2 %v1578_v31  ;;  %v1550_v31 = vld [vmem:[%s4581_s2 + $0x1f8] sm:$0xff] }
 0x5da   :  { %1725 = vmatpush.msra.mxu2 %v1577_v46  ;;  %v1565_v46 = vld [vmem:[%s4581_s2 + $0x270] sm:$0xff] }
 0x5dc   :  { %1726 = vmatpush.msra.mxu2 %v1576_v33  ;;  %v1549_v33 = vld [vmem:[%s4581_s2 + $0x1f0] sm:$0xff] }
 0x5de   :  { %v1246_v2 = vpop.f32.mrf.mxu2  ;;  %1727 = vmatpush.msra.mxu2 %v1575_v1  ;;  %v1564_v1 = vld [vmem:[%s4581_s2 + $0x268] sm:$0xff] }
 0x5df   :  { %2697 = vmatmul.msk.f32.gmra.mxu3 %vm26_vm3, %v4595_v44  ;;  %2708 = vmatmul.msk.f32.gmra.mxu2 %vm118_vm4, %v3295_v62 }
 0x5e0   :  { %1728 = vmatpush.msra.mxu2 %v1574_v8  ;;  %v1548_v8 = vld [vmem:[%s4581_s2 + $0x1e8] sm:$0xff] }
 0x5e2   :  { %1729 = vmatpush.msra.mxu2 %v1573_v45  ;;  %v1563_v45 = vld [vmem:[%s4581_s2 + $0x260] sm:$0xff] }
 0x5e4   :  { %1730 = vmatpush.msra.mxu2 %v1572_v28  ;;  %v1547_v28 = vld [vmem:[%s4581_s2 + $0x1e0] sm:$0xff] }
 0x5e6   :  { %v1249_v48 = vpop.f32.mrf.mxu2  ;;  %1731 = vmatpush.msra.mxu2 %v1571_v59  ;;  %v1546_v59 = vld [vmem:[%s4581_s2 + $0x1d8] sm:$0xff] }
 0x5e7   :  { %2698 = vmatmul.msk.f32.gmra.mxu3 %vm26_vm3, %v4596_v53  ;;  %1593 = vmatpush.msrb.mxu0 %v1546_v59  ;;  %v2843_v59 = vld [vmem:[%s4580_s1 + $0xd0] sm:$0x1] }
 0x5ee   :  { %v1252_v10 = vpop.f32.mrf.mxu2 }
 0x5ef   :  { %2699 = vmatmul.msk.f32.gmra.mxu3 %vm26_vm3, %v4597_v13 }
 0x5f7   :  { %2700 = vmatmul.msk.f32.gmra.mxu3 %vm26_vm3, %v4598_v61 }
 0x614   :  { %v1509_v43 = vpop.permute.xlu2 %1508 }
 0x615   :  { %v1529_v13 = vsel %vm354_vm6, %v3675_v60, %v1509_v43  ;;  %v1545_v43 = vld [vmem:[%s4581_s2 + $0x1d0] sm:$0xff] }
 0x616   :  { %1594 = vmatpush.msrb.mxu0 %v1545_v43 }
 0x620   :  { %v1379_v21 = vpop.permute.xlu0 %1378 }
 0x621   :  { %v1413_v32 = vsel %vm354_vm6, %v3652_v6, %v1379_v21 }
 0x628   :  { %v1381_v25 = vpop.permute.xlu1 %1380 }
 0x629   :  { %v1414_v44 = vsel %vm354_vm6, %v3645_v9, %v1381_v25  ;;  %v1544_v25 = vld [vmem:[%s4581_s2 + $0x1c8] sm:$0xff] }
 0x62a   :  { %1595 = vmatpush.msrb.mxu0 %v1544_v25 }
 0x63c   :  { %v1158_v55 = vpop.f32.mrf.mxu3 }
 0x644   :  { %v3743_v49 = vpop.f32.mrf.mxu3 }
 0x652   :  { %v1497_v17 = vpop.f32.mrf.mxu2 }
 0x653   :  { %1520 = vrot.lane.b32.xlu0 %v1497_v17, %s2873_s8 }
 0x65a   :  { %v1359_v62 = vpop.f32.mrf.mxu3  ;;  %v1500_v41 = vpop.f32.mrf.mxu2 }
 0x65b   :  { %1398 = vrot.lane.b32.xlu1 %v1359_v62, %s2873_s8  ;;  %1510 = vrot.lane.b32.xlu0 %v1471_v52, %s2871_s0 }
 0x662   :  { %v1362_v18 = vpop.f32.mrf.mxu3  ;;  %v1503_v58 = vpop.f32.mrf.mxu2 }
 0x663   :  { %1400 = vrot.lane.b32.xlu2 %v1362_v18, %s2873_s8  ;;  %1522 = vrot.lane.b32.xlu1 %v1500_v41, %s2873_s8  ;;  %v1568_v41 = vld [vmem:[%s4581_s2 + $0x288] sm:$0xff]  ;;  %v1558_v18 = vld [vmem:[%s4581_s2 + $0x238] sm:$0xff] }
 0x66a   :  { %v1365_v39 = vpop.f32.mrf.mxu3 }
 0x66b   :  { %1382 = vrot.lane.b32.xlu2 %v1330_v51, %s2871_s0  ;;  %1402 = vrot.lane.b32.xlu0 %v1365_v39, %s2873_s8  ;;  %v1567_v39 = vld [vmem:[%s4581_s2 + $0x280] sm:$0xff] }
 0x66c   :  { %1512 = vrot.lane.b32.xlu1 %v1474_v0, %s2871_s0 }
 0x672   :  { %v1368_v27 = vpop.f32.mrf.mxu3 }
 0x673   :  { %1384 = vrot.lane.b32.xlu0 %v1333_v56, %s2871_s0  ;;  %1524 = vrot.lane.b32.xlu2 %v1503_v58, %s2873_s8  ;;  %v1557_v58 = vld [vmem:[%s4581_s2 + $0x230] sm:$0xff] }
 0x674   :  { %1404 = vrot.lane.b32.xlu1 %v1368_v27, %s2873_s8  ;;  %v1556_v27 = vld [vmem:[%s4581_s2 + $0x228] sm:$0xff] }
 0x67a   :  { %v1371_v3 = vpop.f32.mrf.mxu3 }
 0x67b   :  { %1406 = vrot.lane.b32.xlu0 %v1371_v3, %s2873_s8  ;;  %1386 = vrot.lane.b32.xlu2 %v1336_v15, %s2871_s0  ;;  %v1554_v3 = vld [vmem:[%s4581_s2 + $0x218] sm:$0xff] }
 0x67c   :  { %2805 = vrot.lane.b32.xlu1 %v2804_v29, %s2871_s0  ;;  %v1555_v29 = vld [vmem:[%s4581_s2 + $0x220] sm:$0xff] }
 0x683   :  { %1279 = vrot.lane.b32.xlu2 %v1240_v38, %s2873_s8 }
 0x684   :  { %1281 = vrot.lane.b32.xlu1 %v1243_v47, %s2873_s8 }
 0x68c   :  { %1283 = vrot.lane.b32.xlu1 %v1246_v2, %s2873_s8 }
 0x694   :  { %1285 = vrot.lane.b32.xlu1 %v1249_v48, %s2873_s8 }
 0x69c   :  { %1287 = vrot.lane.b32.xlu1 %v1252_v10, %s2873_s8 }
 0x6a4   :  { %1174 = vrot.lane.b32.xlu1 %v1158_v55, %s2873_s8 }
 0x6bd   :  { %v1401_v11 = vpop.permute.xlu2 %1400 }
 0x6be   :  { %v1419_v53 = vsel %vm1182_vm11, %v1414_v44, %v1401_v11  ;;  %v1543_v44 = vld [vmem:[%s4581_s2 + $0x1c0] sm:$0xff]  ;;  %v1542_v11 = vld [vmem:[%s4581_s2 + $0x1b8] sm:$0xff] }
 0x6bf   :  { %1430 = vrot.lane.b32.xlu2 %v1419_v53, %s2874_s7  ;;  %1596 = vmatpush.msrb.mxu0 %v1543_v44  ;;  %v1541_v53 = vld [vmem:[%s4581_s2 + $0x1b0] sm:$0xff] }
 0x6c1   :  { %1597 = vmatpush.msrb.mxu0 %v1542_v11 }
 0x6c3   :  { %1598 = vmatpush.msrb.mxu0 %v1541_v53 }
 0x6c5   :  { %v1521_v61 = vpop.permute.xlu0 %1520  ;;  %v1383_v52 = vpop.permute.xlu2 %1382 }
 0x6c6   :  { %v1532_v14 = vsel %vm1182_vm11, %v1529_v13, %v1521_v61  ;;  %v1415_v6 = vsel %vm354_vm6, %v3639_v7, %v1383_v52  ;;  %v1540_v13 = vld [vmem:[%s4581_s2 + $0x1a8] sm:$0xff] }
 0x6c7   :  { %2716 = vmatmul.msk.f32.vlgmr.msra.gmra.mxu2 %vm819_vm8, %v1532_v14  ;;  %1599 = vmatpush.msrb.mxu0 %v1540_v13 }
 0x6cd   :  { %v1399_v50 = vpop.permute.xlu1 %1398  ;;  %v1511_v51 = vpop.permute.xlu0 %1510 }
 0x6ce   :  { %v1418_v9 = vsel %vm1182_vm11, %v1413_v32, %v1399_v50  ;;  %v1530_v56 = vsel %vm354_vm6, %v3669_v24, %v1511_v51  ;;  %v1525_v2 = vpop.permute.xlu2 %1524  ;;  %v1539_v50 = vld [vmem:[%s4581_s2 + $0x1a0] sm:$0xff]  ;;  %v1537_v51 = vld [vmem:[%s4581_s2 + $0x190] sm:$0xff] }
 0x6cf   :  { %1428 = vrot.lane.b32.xlu0 %v1418_v9, %s2874_s7  ;;  %v1538_v9 = vld [vmem:[%s4581_s2 + $0x198] sm:$0xff]  ;;  %1600 = vmatpush.msrb.mxu0 %v1539_v50 }
 0x6d1   :  { %1601 = vmatpush.msrb.mxu0 %v1538_v9 }
 0x6d3   :  { %1602 = vmatpush.msrb.mxu0 %v1537_v51 }
 0x6d5   :  { %v1523_v0 = vpop.permute.xlu1 %1522 }
 0x6d6   :  { %v1533_v60 = vsel %vm1182_vm11, %v1530_v56, %v1523_v0  ;;  %v1536_v56 = vld [vmem:[%s4581_s2 + $0x188] sm:$0xff] }
 0x6d7   :  { %1263 = vrot.lane.b32.xlu0 %v3682_v4, %s2871_s0  ;;  %2717 = vmatmul.msk.f32.gmra.mxu2 %vm819_vm8, %v1533_v60 }
 0x6d8   :  { %1603 = vmatpush.msrb.mxu0 %v1536_v56 }
 0x6dd   :  { %v1403_v15 = vpop.permute.xlu0 %1402 }
 0x6de   :  { %v1513_v38 = vpop.permute.xlu1 %1512  ;;  %v1420_v47 = vsel %vm1182_vm11, %v1415_v6, %v1403_v15 }
 0x6df   :  { %v1531_v48 = vsel %vm354_vm6, %v3662_v20, %v1513_v38  ;;  %1265 = vrot.lane.b32.xlu0 %v3688_v12, %s2871_s0  ;;  %1432 = vrot.lane.b32.xlu2 %v1420_v47, %s2874_s7  ;;  %v1387_v20 = vpop.permute.xlu2 %1386 }
 0x6e0   :  { %v1534_v24 = vsel %vm1182_vm11, %v1531_v48, %v1525_v2  ;;  %v1417_v12 = vsel %vm354_vm6, %v3619_v22, %v1387_v20  ;;  %v1561_v22 = vld [vmem:[%s4581_s2 + $0x250] sm:$0xff] }
 0x6e1   :  { %2718 = vmatmul.msk.f32.gmra.mxu2 %vm819_vm8, %v1534_v24 }
 0x6e5   :  { %v1385_v4 = vpop.permute.xlu0 %1384 }
 0x6e6   :  { %v1416_v7 = vsel %vm354_vm6, %v3629_v54, %v1385_v4  ;;  %v1405_v55 = vpop.permute.xlu1 %1404  ;;  %v1562_v54 = vld [vmem:[%s4581_s2 + $0x258] sm:$0xff] }
 0x6e7   :  { %1267 = vrot.lane.b32.xlu0 %v3694_v5, %s2871_s0  ;;  %v1421_v10 = vsel %vm1182_vm11, %v1416_v7, %v1405_v55  ;;  %1628 = vmatpush.msrb.mxu3 %v1562_v54  ;;  %v1560_v5 = vld [vmem:[%s4581_s2 + $0x248] sm:$0xff]  ;;  %v1280_v61 = vpop.permute.xlu2 %1279 }
 0x6e8   :  { %1434 = vrot.lane.b32.xlu2 %v1421_v10, %s2874_s7 }
 0x6e9   :  { %1629 = vmatpush.msrb.mxu3 %v1561_v22 }
 0x6eb   :  { %1630 = vmatpush.msrb.mxu3 %v1560_v5 }
 0x6ed   :  { %v1407_v17 = vpop.permute.xlu0 %1406 }
 0x6ee   :  { %v1422_v62 = vsel %vm1182_vm11, %v1417_v12, %v1407_v17  ;;  %v2806_v21 = vpop.permute.xlu1 %2805 }
 0x6ef   :  { %1166 = vrot.lane.b32.xlu0 %v3712_v34, %s2871_s0  ;;  %v1570_v34 = vld [vmem:[%s4581_s2 + $0x298] sm:$0xff]  ;;  %v2807_v14 = vunpack.i.l.bf16 %v2806_v21  ;;  %v2808_v38 = vunpack.i.h.bf16 %v2806_v21 }
 0x6f0   :  { %1436 = vrot.lane.b32.xlu2 %v1422_v62, %s2874_s7  ;;  %1668 = vmatpush.msrb.mxu1 %v1570_v34 }
 0x6f1   :  { %v1294_v52 = vsel %vm354_vm6, %v3594_v42, %v2807_v14  ;;  %v1535_v42 = vld [vmem:[%s4581_s2 + $0x180] sm:$0xff]  ;;  %v1295_v2 = vsel %vm354_vm6, %v3590_v63, %v2808_v38 }
 0x6f2   :  { %v1299_v6 = vsel %vm1182_vm11, %v1294_v52, %v1280_v61  ;;  %1604 = vmatpush.msrb.mxu0 %v1535_v42 }
 0x6f6   :  { %v1282_v32 = vpop.permute.xlu1 %1281 }
 0x6f7   :  { %1176 = vrot.lane.b32.xlu0 %v3743_v49, %s2873_s8  ;;  %v1559_v49 = vld [vmem:[%s4581_s2 + $0x240] sm:$0xff]  ;;  %v1300_v24 = vsel %vm1182_vm11, %v1295_v2, %v1282_v32 }
 0x6f8   :  { %1168 = vrot.lane.b32.xlu2 %v3715_v26, %s2871_s0  ;;  %v1569_v26 = vld [vmem:[%s4581_s2 + $0x290] sm:$0xff]  ;;  %1631 = vmatpush.msrb.mxu3 %v1559_v49 }
 0x6f9   :  { %1669 = vmatpush.msrb.mxu1 %v1569_v26 }
 0x6fa   :  { %1632 = vmatpush.msrb.mxu3 %v1558_v18 }
 0x6fb   :  { %1670 = vmatpush.msrb.mxu1 %v1568_v41 }
 0x6fc   :  { %1633 = vmatpush.msrb.mxu3 %v1557_v58 }
 0x6fd   :  { %1671 = vmatpush.msrb.mxu1 %v1567_v39 }
 0x6fe   :  { %1634 = vmatpush.msrb.mxu3 %v1556_v27  ;;  %v1284_v47 = vpop.permute.xlu1 %1283 }
 0x6ff   :  { %1672 = vmatpush.msrb.mxu1 %v1566_v57 }
 0x700   :  { %1635 = vmatpush.msrb.mxu3 %v1555_v29 }
 0x701   :  { %1673 = vmatpush.msrb.mxu1 %v1565_v46 }
 0x702   :  { %1636 = vmatpush.msrb.mxu3 %v1554_v3 }
 0x703   :  { %1674 = vmatpush.msrb.mxu1 %v1564_v1 }
 0x704   :  { %1637 = vmatpush.msrb.mxu3 %v1553_v30 }
 0x705   :  { %1675 = vmatpush.msrb.mxu1 %v1563_v45  ;;  %v2841_v45 = vld [vmem:[%s4580_s1 + $0xc0] sm:$0xff] }
 0x706   :  { %1638 = vmatpush.msrb.mxu3 %v1552_v40  ;;  %v1286_v10 = vpop.permute.xlu1 %1285 }
 0x708   :  { %1639 = vmatpush.msrb.mxu3 %v1551_v35 }
 0x70a   :  { %1640 = vmatpush.msrb.mxu3 %v1550_v31 }
 0x70c   :  { %1641 = vmatpush.msrb.mxu3 %v1549_v33 }
 0x70e   :  { %1642 = vmatpush.msrb.mxu3 %v1548_v8  ;;  %v1288_v5 = vpop.permute.xlu1 %1287  ;;  %v2839_v8 = vld [vmem:[%s4580_s1 + $0xb0] sm:$0xff] }
 0x710   :  { %1643 = vmatpush.msrb.mxu3 %v1547_v28  ;;  %v2842_v28 = vld [vmem:[%s4580_s1 + $0xc8] sm:$0xff] }
 0x716   :  { %v1175_v58 = vpop.permute.xlu1 %1174 }
 0x719   :  { %v1431_v0 = vpop.permute.xlu2 %1430 }
 0x71a   :  { %v1444_v7 = vsel %vm819_vm8, %v1300_v24, %v1431_v0 }
 0x739   :  { %v1433_v48 = vpop.permute.xlu2 %1432 }
 0x741   :  { %v1429_v60 = vpop.permute.xlu0 %1428 }
 0x742   :  { %v1443_v15 = vsel %vm819_vm8, %v1299_v6, %v1429_v60  ;;  %2711 = vmatmul.msk.f32.vlgmr.msrb.gmra.mxu1 %vm1182_vm11, %v1429_v60  ;;  %v1435_v17 = vpop.permute.xlu2 %1434 }
 0x743   :  { %1644 = vmatmul.f32.vlgmr.msrb.gmra.mxu3 %v1443_v15 }
 0x749   :  { %v1264_v4 = vpop.permute.xlu0 %1263 }
 0x74a   :  { %2712 = vmatmul.msk.f32.gmra.mxu1 %vm1182_vm11, %v1431_v0  ;;  %v1296_v55 = vsel %vm354_vm6, %v3586_v37, %v1264_v4  ;;  %v1733_v62 = vpop.f32.mrf.mxu2  ;;  %v1437_v49 = vpop.permute.xlu2 %1436 }
 0x74b   :  { %1647 = vmatmul.f32.gmra.mxu3 %v1444_v7  ;;  %v1301_v20 = vsel %vm1182_vm11, %v1296_v55, %v1284_v47  ;;  %v1745_v35 = vmul.f32 0.01, %v1733_v62  ;;  %vm1742_vm14 = vcmp.gt.f32.partialorder %v1733_v62, 0.0 }
 0x74c   :  { %v1445_v63 = vsel %vm819_vm8, %v1301_v20, %v1433_v48 }
 0x74d   :  { %v3994_v1 = vsel %vm1742_vm14, %v1733_v62, %v1745_v35  ;;  %v2845_v62 = vld [vmem:[%s4580_s1 + $0xd8] sm:$0xff] }
 0x751   :  { %v1266_v12 = vpop.permute.xlu0 %1265 }
 0x752   :  { %2713 = vmatmul.msk.f32.gmra.mxu1 %vm1182_vm11, %v1433_v48  ;;  %v1297_v54 = vsel %vm354_vm6, %v3582_v19, %v1266_v12  ;;  %v1169_v40 = vpop.permute.xlu2 %1168  ;;  %v2844_v12 = vld [vmem:[%s4580_s1 + $0x78] sm:$0xff] }
 0x753   :  { %1650 = vmatmul.f32.gmra.mxu3 %v1445_v63  ;;  %v1302_v22 = vsel %vm1182_vm11, %v1297_v54, %v1286_v10 }
 0x754   :  { %v1446_v26 = vsel %vm819_vm8, %v1302_v22, %v1435_v17  ;;  %v2846_v22 = vld [vmem:[%s4580_s1 + $0x80] sm:$0xff] }
 0x759   :  { %v1268_v34 = vpop.permute.xlu0 %1267 }
 0x75a   :  { %2714 = vmatmul.msk.f32.gmra.mxu1 %vm1182_vm11, %v1435_v17  ;;  %v1736_v37 = vpop.f32.mrf.mxu2  ;;  %v1298_v41 = vsel %vm354_vm6, %v3577_v16, %v1268_v34 }
 0x75b   :  { %1653 = vmatmul.f32.gmra.mxu3 %v1446_v26  ;;  %v1303_v18 = vsel %vm1182_vm11, %v1298_v41, %v1288_v5  ;;  %v1746_v30 = vmul.f32 0.01, %v1736_v37  ;;  %vm1743_vm13 = vcmp.gt.f32.partialorder %v1736_v37, 0.0  ;;  %v2847_v5 = vld [vmem:[%s4580_s1 + $0xe0] sm:$0xff]  ;;  %v2849_v26 = vld [vmem:[%s4580_s1 + $0xe8] sm:$0x3] }
 0x75c   :  { %v1447_v27 = vsel %vm819_vm8, %v1303_v18, %v1437_v49  ;;  %v2850_v41 = vld [vmem:[%s4580_s1 + $0x90] sm:$0xff] }
 0x75d   :  { %v3990_v46 = vsel %vm1743_vm13, %v1736_v37, %v1746_v30  ;;  %v2848_v37 = vld [vmem:[%s4580_s1 + $0x88] sm:$0xff] }
 0x761   :  { %v1167_v39 = vpop.permute.xlu0 %1166 }
 0x762   :  { %v1180_v19 = vsel %vm354_vm6, %v3635_v23, %v1167_v39  ;;  %2715 = vmatmul.msk.f32.gmra.mxu1 %vm1182_vm11, %v1437_v49  ;;  %v1181_v23 = vsel %vm354_vm6, %v3625_v36, %v1169_v40  ;;  %v2840_v36 = vld [vmem:[%s4580_s1 + $0xb8] sm:$0xff] }
 0x763   :  { %v1183_v29 = vsel %vm1182_vm11, %v1180_v19, %v1175_v58  ;;  %1656 = vmatmul.f32.gmra.mxu3 %v1447_v27  ;;  %v2851_v39 = vld [vmem:[%s4580_s1 + $0x98] sm:$0xff]  ;;  %v2852_v58 = vld [vmem:[%s4580_s1 + $0xa0] sm:$0xff]  ;;  %v2853_v19 = vld [vmem:[%s4580_s1 + $0xa8] sm:$0x1] }
 0x764   :  { %v1739_v3 = vpop.f32.mrf.mxu2  ;;  %2709 = vmatmul.msk.f32.vlgmr.msrb.gmra.mxu0 %vm819_vm8, %v1183_v29 }
 0x765   :  { %vm1744_vm12 = vcmp.gt.f32.partialorder %v1739_v3, 0.0  ;;  %v1747_v16 = vmul.f32 0.01, %v1739_v3 }
 0x767   :  { %v3984_v57 = vsel %vm1744_vm12, %v1739_v3, %v1747_v16 }
 0x768   :  { %2727 = vmatpush.msk.msrb.mxu2 %vm134_vm2, %v3984_v57 }
 0x769   :  { %v1177_v31 = vpop.permute.xlu0 %1176 }
 0x76a   :  { %v1184_v33 = vsel %vm1182_vm11, %v1181_v23, %v1177_v31  ;;  %1826 = vmatpush.msrb.mxu2 %v3990_v46 }
 0x76c   :  { %1827 = vmatpush.msrb.mxu2 %v3994_v1  ;;  %2710 = vmatmul.msk.f32.gmra.mxu0 %vm819_vm8, %v1184_v33 }
 0x76d   :  { %2728 = vmatmul.msk.f32.vlgmr.msrb.gmra.mxu2 %vm118_vm4, %v2839_v8 }
 0x775   :  { %2729 = vmatmul.msk.f32.gmra.mxu2 %vm118_vm4, %v2840_v36 }
 0x77d   :  { %2730 = vmatmul.msk.f32.gmra.mxu2 %vm118_vm4, %v2841_v45  ;;  %v4136_v45 = vld [vmem:[%s4580_s1 + $0x38] sm:$0xff] }
 0x785   :  { %2731 = vmatmul.msk.f32.gmra.mxu2 %vm118_vm4, %v2842_v28  ;;  %v4150_v28 = vld [vmem:[%s4580_s1 + $0x48] sm:$0xff] }
 0x78d   :  { %2732 = vmatmul.msk.f32.gmra.mxu2 %vm118_vm4, %v2843_v59  ;;  %v4157_v59 = vld [vmem:[%s4580_s1 + $0x50] sm:$0xff] }
 0x7bf   :  { %v1677_v43 = vpop.f32.mrf.mxu1 }
 0x7c6   :  { %v1645_v25 = vpop.f32.mrf.mxu3 }
 0x7c7   :  { %v1680_v21 = vpop.f32.mrf.mxu1  ;;  %v1678_v6 = vadd.f32 %v1677_v43, %v1645_v25  ;;  %v4164_v43 = vld [vmem:[%s4580_s1 + $0x58] sm:$0x1] }
 0x7c9   :  { %v1697_v48 = vmul.f32 0.01, %v1678_v6  ;;  %vm1692_vm12 = vcmp.gt.f32.partialorder %v1678_v6, 0.0 }
 0x7cb   :  { %v4036_v20 = vsel %vm1692_vm12, %v1678_v6, %v1697_v48 }
 0x7ce   :  { %v1648_v44 = vpop.f32.mrf.mxu3 }
 0x7cf   :  { %v1683_v11 = vpop.f32.mrf.mxu1  ;;  %v1681_v56 = vadd.f32 %v1680_v21, %v1648_v44 }
 0x7d1   :  { %v1698_v38 = vmul.f32 0.01, %v1681_v56  ;;  %vm1693_vm10 = vcmp.gt.f32.partialorder %v1681_v56, 0.0 }
 0x7d3   :  { %v4032_v55 = vsel %vm1693_vm10, %v1681_v56, %v1698_v38  ;;  %v2859_v56 = vld [vmem:[%s4580_s1] sm:$0xff] }
 0x7d4   :  { %v2814_v29 = vpack.i.bf16 %v4036_v20, %v4032_v55 }
 0x7d6   :  { %v1651_v53 = vpop.f32.mrf.mxu3 }
 0x7d7   :  { %v1686_v13 = vpop.f32.mrf.mxu1  ;;  %v1684_v51 = vadd.f32 %v1683_v11, %v1651_v53 }
 0x7d9   :  { %v1699_v15 = vmul.f32 0.01, %v1684_v51  ;;  %vm1694_vm9 = vcmp.gt.f32.partialorder %v1684_v51, 0.0 }
 0x7db   :  { %v4028_v24 = vsel %vm1694_vm9, %v1684_v51, %v1699_v15 }
 0x7de   :  { %v1654_v61 = vpop.f32.mrf.mxu3 }
 0x7df   :  { %v1687_v32 = vadd.f32 %v1686_v13, %v1654_v61  ;;  %v1689_v50 = vpop.f32.mrf.mxu1 }
 0x7e1   :  { %v1606_v14 = vpop.f32.mrf.mxu0  ;;  %v1700_v0 = vmul.f32 0.01, %v1687_v32  ;;  %vm1695_vm7 = vcmp.gt.f32.partialorder %v1687_v32, 0.0 }
 0x7e2   :  { %v1614_v10 = vmul.f32 0.01, %v1606_v14  ;;  %vm1612_vm14 = vcmp.gt.f32.partialorder %v1606_v14, 0.0 }
 0x7e3   :  { %v4024_v47 = vsel %vm1695_vm7, %v1687_v32, %v1700_v0 }
 0x7e4   :  { %v4051_v63 = vsel %vm1612_vm14, %v1606_v14, %v1614_v10  ;;  %v2809_v16 = vpack.i.bf16 %v4028_v24, %v4024_v47 }
 0x7e6   :  { %v1657_v9 = vpop.f32.mrf.mxu3 }
 0x7e7   :  { %v1690_v52 = vadd.f32 %v1689_v50, %v1657_v9 }
 0x7e9   :  { %vm1696_vm15 = vcmp.gt.f32.partialorder %v1690_v52, 0.0  ;;  %v1701_v60 = vmul.f32 0.01, %v1690_v52  ;;  %v1609_v2 = vpop.f32.mrf.mxu0 }
 0x7ea   :  { %v1615_v7 = vmul.f32 0.01, %v1609_v2  ;;  %vm1613_vm13 = vcmp.gt.f32.partialorder %v1609_v2, 0.0 }
 0x7eb   :  { %v4018_v42 = vsel %vm1696_vm15, %v1690_v52, %v1701_v60 }
 0x7ec   :  { %2719 = vmatpush.msk.msra.mxu0 %vm33_vm0, %v4018_v42  ;;  %2733 = vmatpush.msk.msra.mxu3 %vm33_vm0, %v4018_v42  ;;  %v4044_v17 = vsel %vm1613_vm13, %v1609_v2, %v1615_v7  ;;  %v2860_v2 = vld [vmem:[%s4580_s1 + $0x8] sm:$0xff] }
 0x7ee   :  { %1766 = vmatpush.msra.mxu0 %v4024_v47  ;;  %1856 = vmatpush.msra.mxu3 %v4024_v47 }
 0x7f0   :  { %v1829_v4 = vpop.f32.mrf.mxu2  ;;  %1767 = vmatpush.msra.mxu0 %v4028_v24  ;;  %1857 = vmatpush.msra.mxu3 %v4028_v24 }
 0x7f2   :  { %1768 = vmatpush.msra.mxu0 %v4032_v55  ;;  %1858 = vmatpush.msra.mxu3 %v4032_v55 }
 0x7f4   :  { %1769 = vmatpush.msra.mxu0 %v4036_v20  ;;  %1859 = vmatpush.msra.mxu3 %v4036_v20 }
 0x7f5   :  { %2720 = vmatmul.msk.f32.vlgmr.msra.gmra.mxu0 %vm26_vm3, %v2844_v12  ;;  %2734 = vmatmul.msk.f32.vlgmr.msra.gmra.mxu3 %vm26_vm3, %v2845_v62 }
 0x7f6   :  { %1791 = vmatpush.msrb.mxu0 %v4044_v17 }
 0x7f8   :  { %1792 = vmatpush.msrb.mxu0 %v4051_v63  ;;  %v1832_v54 = vpop.f32.mrf.mxu2 }
 0x7fd   :  { %2721 = vmatmul.msk.f32.gmra.mxu0 %vm26_vm3, %v2846_v22  ;;  %2735 = vmatmul.msk.f32.gmra.mxu3 %vm26_vm3, %v2847_v5  ;;  %v2863_v22 = vld [vmem:[%s4580_s1 + $0x20] sm:$0xff] }
 0x800   :  { %v1835_v34 = vpop.f32.mrf.mxu2 }
 0x801   :  { %1913 = vrot.lane.b32.xlu0 %v1835_v34, %s2870_s24  ;;  %v2864_v34 = vld [vmem:[%s4580_s1 + $0x28] sm:$0xff] }
 0x805   :  { %2722 = vmatmul.msk.f32.vlgmr.msrb.gmra.mxu0 %vm65_vm1, %v2848_v37  ;;  %2736 = vmatmul.msk.f32.gmra.mxu3 %vm26_vm3, %v2849_v26  ;;  %v2865_v26 = vld [vmem:[%s4580_s1 + $0x30] sm:$0x1] }
 0x808   :  { %v1838_v49 = vpop.f32.mrf.mxu2 }
 0x809   :  { %1915 = vrot.lane.b32.xlu2 %v1838_v49, %s2870_s24  ;;  %v2866_v49 = vld [vmem:[%s4580_s1 + $0x60] sm:$0xff] }
 0x80d   :  { %2723 = vmatmul.msk.f32.gmra.mxu0 %vm65_vm1, %v2850_v41  ;;  %v2867_v41 = vld [vmem:[%s4580_s1 + $0x68] sm:$0xff] }
 0x810   :  { %v1841_v18 = vpop.f32.mrf.mxu2 }
 0x811   :  { %1909 = vrot.lane.b32.xlu2 %v1829_v4, %s2870_s24  ;;  %1917 = vrot.lane.b32.xlu1 %v1841_v18, %s2870_s24  ;;  %v2868_v18 = vld [vmem:[%s4580_s1 + $0x70] sm:$0x3] }
 0x815   :  { %2724 = vmatmul.msk.f32.gmra.mxu0 %vm65_vm1, %v2851_v39 }
 0x819   :  { %1892 = vrot.lane.b32.xlu2 %v4018_v42, %s2870_s24  ;;  %1911 = vrot.lane.b32.xlu1 %v1832_v54, %s2870_s24  ;;  %v2862_v54 = vld [vmem:[%s4580_s1 + $0x18] sm:$0xff] }
 0x81d   :  { %2725 = vmatmul.msk.f32.gmra.mxu0 %vm65_vm1, %v2852_v58 }
 0x821   :  { %1935 = vrot.lane.b32.xlu2 %v3984_v57, %s2870_s24 }
 0x825   :  { %2726 = vmatmul.msk.f32.gmra.mxu0 %vm65_vm1, %v2853_v19 }
 0x863   :  { %v1916_v30 = vpop.permute.xlu2 %1915 }
 0x864   :  { %v4113_v23 = vsel %vm65_vm1, %v4024_v47, %v1916_v30 }
 0x86b   :  { %v1910_v33 = vpop.permute.xlu2 %1909 }
 0x86c   :  { %v4130_v36 = vsel %vm65_vm1, %v4036_v20, %v1910_v33 }
 0x872   :  { %v1771_v27 = vpop.f32.mrf.mxu0 }
 0x873   :  { %1872 = vrot.lane.b32.xlu1 %v1771_v27, %s2870_s24  ;;  %v1914_v57 = vpop.permute.xlu0 %1913  ;;  %v1893_v9 = vpop.permute.xlu2 %1892 }
 0x874   :  { %v4118_v31 = vsel %vm65_vm1, %v4028_v24, %v1914_v57 }
 0x878   :  { %v1861_v53 = vpop.f32.mrf.mxu3 }
 0x87a   :  { %v1774_v3 = vpop.f32.mrf.mxu0 }
 0x87b   :  { %1874 = vrot.lane.b32.xlu0 %v1774_v3, %s2870_s24  ;;  %2815 = vrot.lane.b32.xlu1 %v2814_v29, %s2870_s24  ;;  %v1936_v7 = vpop.permute.xlu2 %1935 }
 0x880   :  { %v1864_v51 = vpop.f32.mrf.mxu3 }
 0x882   :  { %v1794_v25 = vpop.f32.mrf.mxu0 }
 0x883   :  { %v1918_v40 = vpop.permute.xlu1 %1917  ;;  %2810 = vrot.lane.b32.xlu0 %v2809_v16, %s2870_s24  ;;  %1931 = vrot.lane.b32.xlu1 %v3994_v1, %s2870_s24 }
 0x884   :  { %v4107_v35 = vsel %vm65_vm1, %v4018_v42, %v1918_v40 }
 0x885   :  { %2753 = vmatpush.msk.msra.mxu2 %vm33_vm0, %v4107_v35 }
 0x887   :  { %2143 = vmatpush.msra.mxu2 %v4113_v23 }
 0x888   :  { %v1867_v24 = vpop.f32.mrf.mxu3 }
 0x889   :  { %2144 = vmatpush.msra.mxu2 %v4118_v31  ;;  %v4207_v10 = vsel %vm65_vm1, %v1867_v24, %v1936_v7 }
 0x88a   :  { %v1797_v21 = vpop.f32.mrf.mxu0 }
 0x88b   :  { %v1912_v1 = vpop.permute.xlu1 %1911  ;;  %1933 = vrot.lane.b32.xlu0 %v3990_v46, %s2870_s24  ;;  %v4143_v46 = vld [vmem:[%s4580_s1 + $0x40] sm:$0xff] }
 0x88c   :  { %v4125_v8 = vsel %vm65_vm1, %v4032_v55, %v1912_v1 }
 0x88d   :  { %2145 = vmatpush.msra.mxu2 %v4125_v8 }
 0x88f   :  { %2146 = vmatpush.msra.mxu2 %v4130_v36 }
 0x890   :  { %2754 = vmatmul.msk.f32.vlgmr.msra.gmra.mxu2 %vm26_vm3, %v4136_v45 }
 0x892   :  { %v1800_v44 = vpop.f32.mrf.mxu0 }
 0x898   :  { %2755 = vmatmul.msk.f32.gmra.mxu2 %vm26_vm3, %v4143_v46 }
 0x89a   :  { %v1803_v11 = vpop.f32.mrf.mxu0 }
 0x8a0   :  { %2756 = vmatmul.msk.f32.gmra.mxu2 %vm26_vm3, %v4150_v28 }
 0x8a2   :  { %v1806_v32 = vpop.f32.mrf.mxu0 }
 0x8a3   :  { %v4179_v52 = vsel %vm65_vm1, %v1806_v32, %v1893_v9 }
 0x8a8   :  { %2757 = vmatmul.msk.f32.gmra.mxu2 %vm26_vm3, %v4157_v59 }
 0x8b0   :  { %2758 = vmatmul.msk.f32.gmra.mxu2 %vm26_vm3, %v4164_v43 }
 0x8e5   :  { %v1873_v13 = vpop.permute.xlu1 %1872 }
 0x8e6   :  { %v4175_v50 = vsel %vm65_vm1, %v4051_v63, %v1873_v13 }
 0x8ed   :  { %v1875_v61 = vpop.permute.xlu0 %1874  ;;  %v2816_v0 = vpop.permute.xlu1 %2815 }
 0x8ee   :  { %v4170_v14 = vsel %vm65_vm1, %v4044_v17, %v1875_v61  ;;  %v2817_v42 = vunpack.i.l.bf16 %v2816_v0  ;;  %v2818_v47 = vunpack.i.h.bf16 %v2816_v0  ;;  %v2861_v17 = vld [vmem:[%s4580_s1 + $0x10] sm:$0xff] }
 0x8ef   :  { %1957 = vmatpush.msra.mxu1 %v4170_v14 }
 0x8f0   :  { %v4200_v4 = vsel %vm65_vm1, %v1797_v21, %v2817_v42  ;;  %v4204_v55 = vsel %vm65_vm1, %v1794_v25, %v2818_v47 }
 0x8f1   :  { %1958 = vmatpush.msra.mxu1 %v4175_v50 }
 0x8f2   :  { %2737 = vmatmul.msk.f32.vlgmr.msra.gmra.mxu1 %vm65_vm1, %v2859_v56 }
 0x8f3   :  { %2741 = vmatpush.msk.msrb.mxu1 %vm33_vm0, %v4179_v52 }
 0x8f5   :  { %v2811_v60 = vpop.permute.xlu0 %2810  ;;  %v1932_v12 = vpop.permute.xlu1 %1931 }
 0x8f6   :  { %v2813_v6 = vunpack.i.h.bf16 %v2811_v60  ;;  %v2812_v15 = vunpack.i.l.bf16 %v2811_v60  ;;  %v4221_v63 = vsel %vm65_vm1, %v1861_v53, %v1932_v12 }
 0x8f8   :  { %v4188_v38 = vsel %vm65_vm1, %v1803_v11, %v2812_v15  ;;  %v4196_v48 = vsel %vm65_vm1, %v1800_v44, %v2813_v6 }
 0x8f9   :  { %2024 = vmatpush.msrb.mxu1 %v4188_v38 }
 0x8fa   :  { %2738 = vmatmul.msk.f32.gmra.mxu1 %vm65_vm1, %v2860_v2 }
 0x8fb   :  { %2025 = vmatpush.msrb.mxu1 %v4196_v48 }
 0x8fd   :  { %2026 = vmatpush.msrb.mxu1 %v4200_v4  ;;  %v1934_v20 = vpop.permute.xlu0 %1933 }
 0x8fe   :  { %v4217_v62 = vsel %vm65_vm1, %v1864_v51, %v1934_v20 }
 0x8ff   :  { %2027 = vmatpush.msrb.mxu1 %v4204_v55 }
 0x901   :  { %2765 = vmatpush.msk.msra.mxu1 %vm134_vm2, %v4207_v10 }
 0x902   :  { %2742 = vmatmul.msk.f32.vlgmr.msrb.gmra.mxu1 %vm26_vm3, %v2861_v17 }
 0x903   :  { %2289 = vmatpush.msra.mxu1 %v4217_v62 }
 0x905   :  { %2290 = vmatpush.msra.mxu1 %v4221_v63 }
 0x90a   :  { %2743 = vmatmul.msk.f32.gmra.mxu1 %vm26_vm3, %v2862_v54 }
 0x912   :  { %2744 = vmatmul.msk.f32.gmra.mxu1 %vm26_vm3, %v2863_v22 }
 0x913   :  { %v2148_v5 = vpop.f32.mrf.mxu2 }
 0x914   :  { %2202 = vrot.lane.b32.xlu2 %v2148_v5, %s2871_s0 }
 0x91a   :  { %2745 = vmatmul.msk.f32.gmra.mxu1 %vm26_vm3, %v2864_v34 }
 0x91b   :  { %v2151_v37 = vpop.f32.mrf.mxu2 }
 0x91c   :  { %2204 = vrot.lane.b32.xlu1 %v2151_v37, %s2871_s0 }
 0x922   :  { %2746 = vmatmul.msk.f32.gmra.mxu1 %vm26_vm3, %v2865_v26 }
 0x923   :  { %v2154_v39 = vpop.f32.mrf.mxu2 }
 0x92a   :  { %2766 = vmatmul.msk.f32.vlgmr.msra.gmra.mxu1 %vm118_vm4, %v2866_v49 }
 0x92b   :  { %v2157_v19 = vpop.f32.mrf.mxu2 }
 0x932   :  { %2767 = vmatmul.msk.f32.gmra.mxu1 %vm118_vm4, %v2867_v41 }
 0x933   :  { %v2160_v29 = vpop.f32.mrf.mxu2 }
 0x93a   :  { %2768 = vmatmul.msk.f32.gmra.mxu1 %vm118_vm4, %v2868_v18 }
 0x96e   :  { %v2203_v15 = vpop.permute.xlu2 %2202 }
 0x96f   :  { %v4254_v58 = vpop.f32.mrf.mxu1  ;;  %v2237_v7 = vsel %vm354_vm6, %v4130_v36, %v2203_v15  ;;  %v2404_v36 = vld [vmem:[%s4581_s2 + $0x468] sm:$0xff]  ;;  %v2390_v15 = vld [vmem:[%s4581_s2 + $0x3f8] sm:$0xff] }
 0x977   :  { %v4256_v27 = vpop.f32.mrf.mxu1 }
 0x978   :  { %1980 = vmatpush.msrb.mxu3 %v4256_v27 }
 0x97a   :  { %1981 = vmatpush.msrb.mxu3 %v4254_v58 }
 0x97b   :  { %2739 = vmatmul.msk.f32.vlgmr.msrb.gmra.mxu3 %vm65_vm1, %v2859_v56 }
 0x97c   :  { %2759 = vmatpush.msk.msra.mxu3 %vm33_vm0, %v2160_v29 }
 0x97e   :  { %2178 = vmatpush.msra.mxu3 %v2157_v19 }
 0x97f   :  { %v2029_v3 = vpop.f32.mrf.mxu1 }
 0x980   :  { %2179 = vmatpush.msra.mxu3 %v2154_v39 }
 0x982   :  { %2180 = vmatpush.msra.mxu3 %v2151_v37  ;;  %v2403_v37 = vld [vmem:[%s4581_s2 + $0x460] sm:$0xff] }
 0x983   :  { %2740 = vmatmul.msk.f32.gmra.mxu3 %vm65_vm1, %v2860_v2 }
 0x984   :  { %2181 = vmatpush.msra.mxu3 %v2148_v5 }
 0x987   :  { %v2032_v30 = vpop.f32.mrf.mxu1 }
 0x988   :  { %v2819_v16 = vpack.i.bf16 %v2032_v30, %v2029_v3 }
 0x98b   :  { %2760 = vmatmul.msk.f32.vlgmr.msra.gmra.mxu3 %vm26_vm3, %v4136_v45 }
 0x98e   :  { %v2205_v42 = vpop.permute.xlu1 %2204 }
 0x98f   :  { %v2035_v40 = vpop.f32.mrf.mxu1  ;;  %v2238_v47 = vsel %vm354_vm6, %v4125_v8, %v2205_v42  ;;  %v2405_v8 = vld [vmem:[%s4581_s2 + $0x470] sm:$0xff]  ;;  %v2375_v42 = vld [vmem:[%s4581_s2 + $0x380] sm:$0xff] }
 0x993   :  { %2761 = vmatmul.msk.f32.gmra.mxu3 %vm26_vm3, %v4143_v46 }
 0x997   :  { %v2038_v57 = vpop.f32.mrf.mxu1 }
 0x998   :  { %v2824_v33 = vpack.i.bf16 %v2038_v57, %v2035_v40 }
 0x99b   :  { %2762 = vmatmul.msk.f32.gmra.mxu3 %vm26_vm3, %v4150_v28 }
 0x99f   :  { %v4269_v1 = vpop.f32.mrf.mxu1 }
 0x9a0   :  { %2747 = vmatpush.msk.msra.mxu0 %vm33_vm0, %v4269_v1 }
 0x9a2   :  { %2059 = vmatpush.msra.mxu0 %v2038_v57  ;;  %v2396_v57 = vld [vmem:[%s4581_s2 + $0x428] sm:$0xff] }
 0x9a3   :  { %2763 = vmatmul.msk.f32.gmra.mxu3 %vm26_vm3, %v4157_v59 }
 0x9a4   :  { %2060 = vmatpush.msra.mxu0 %v2035_v40 }
 0x9a6   :  { %2061 = vmatpush.msra.mxu0 %v2032_v30  ;;  %v2397_v30 = vld [vmem:[%s4581_s2 + $0x430] sm:$0xff] }
 0x9a7   :  { %v2292_v45 = vpop.f32.mrf.mxu1 }
 0x9a8   :  { %2062 = vmatpush.msra.mxu0 %v2029_v3 }
 0x9a9   :  { %2748 = vmatmul.msk.f32.vlgmr.msra.gmra.mxu0 %vm26_vm3, %v2861_v17  ;;  %v2406_v17 = vld [vmem:[%s4581_s2 + $0x478] sm:$0xff] }
 0x9ab   :  { %2764 = vmatmul.msk.f32.gmra.mxu3 %vm26_vm3, %v4164_v43 }
 0x9af   :  { %v4278_v46 = vpop.f32.mrf.mxu1 }
 0x9b1   :  { %2749 = vmatmul.msk.f32.gmra.mxu0 %vm26_vm3, %v2862_v54 }
 0x9b7   :  { %v2298_v28 = vpop.f32.mrf.mxu1 }
 0x9b8   :  { %2769 = vmatpush.msk.msrb.mxu0 %vm134_vm2, %v2298_v28 }
 0x9b9   :  { %2750 = vmatmul.msk.f32.gmra.mxu0 %vm26_vm3, %v2863_v22 }
 0x9ba   :  { %2318 = vmatpush.msrb.mxu0 %v4278_v46 }
 0x9bc   :  { %2319 = vmatpush.msrb.mxu0 %v2292_v45 }
 0x9be   :  { %2544 = vmatpush.msra.mxu0 %v2406_v17  ;;  %v2373_v17 = vld [vmem:[%s4581_s2 + $0x370] sm:$0xff] }
 0x9c0   :  { %2545 = vmatpush.msra.mxu0 %v2405_v8  ;;  %v2364_v8 = vld [vmem:[%s4581_s2 + $0x328] sm:$0xff] }
 0x9c1   :  { %2751 = vmatmul.msk.f32.gmra.mxu0 %vm26_vm3, %v2864_v34 }
 0x9c2   :  { %2546 = vmatpush.msra.mxu0 %v2404_v36  ;;  %v2387_v36 = vld [vmem:[%s4581_s2 + $0x3e0] sm:$0xff] }
 0x9c4   :  { %2547 = vmatpush.msra.mxu0 %v2403_v37  ;;  %v2362_v37 = vld [vmem:[%s4581_s2 + $0x318] sm:$0xff] }
 0x9c9   :  { %2752 = vmatmul.msk.f32.gmra.mxu0 %vm26_vm3, %v2865_v26  ;;  %v2402_v26 = vld [vmem:[%s4581_s2 + $0x458] sm:$0xff] }
 0x9ca   :  { %2548 = vmatpush.msra.mxu0 %v2402_v26  ;;  %v2361_v26 = vld [vmem:[%s4581_s2 + $0x310] sm:$0xff] }
 0x9d1   :  { %2770 = vmatmul.msk.f32.vlgmr.msrb.gmra.mxu0 %vm118_vm4, %v2866_v49 }
 0x9d9   :  { %2771 = vmatmul.msk.f32.gmra.mxu0 %vm118_vm4, %v2867_v41  ;;  %v2400_v41 = vld [vmem:[%s4581_s2 + $0x448] sm:$0xff] }
 0x9e1   :  { %2772 = vmatmul.msk.f32.gmra.mxu0 %vm118_vm4, %v2868_v18 }
 0x9fe   :  { %v1983_v59 = vpop.f32.mrf.mxu3 }
 0xa06   :  { %v4289_v43 = vpop.f32.mrf.mxu3 }
 0xa0e   :  { %v2183_v25 = vpop.f32.mrf.mxu3 }
 0xa0f   :  { %2222 = vrot.lane.b32.xlu0 %v2183_v25, %s2873_s8 }
 0xa16   :  { %v2186_v21 = vpop.f32.mrf.mxu3 }
 0xa17   :  { %2206 = vrot.lane.b32.xlu0 %v2154_v39, %s2871_s0  ;;  %2224 = vrot.lane.b32.xlu2 %v2186_v21, %s2873_s8  ;;  %v2394_v21 = vld [vmem:[%s4581_s2 + $0x418] sm:$0xff] }
 0xa18   :  { %2492 = vmatpush.msrb.mxu1 %v2394_v21 }
 0xa1e   :  { %v2189_v44 = vpop.f32.mrf.mxu3 }
 0xa1f   :  { %2208 = vrot.lane.b32.xlu2 %v2157_v19, %s2871_s0  ;;  %2226 = vrot.lane.b32.xlu1 %v2189_v44, %s2873_s8  ;;  %v2399_v19 = vld [vmem:[%s4581_s2 + $0x440] sm:$0xff]  ;;  %v2370_v44 = vld [vmem:[%s4581_s2 + $0x358] sm:$0xff] }
 0xa20   :  { %2417 = vmatpush.msrb.mxu2 %v2370_v44 }
 0xa26   :  { %v2064_v11 = vpop.f32.mrf.mxu0  ;;  %v2192_v53 = vpop.f32.mrf.mxu3 }
 0xa27   :  { %2210 = vrot.lane.b32.xlu1 %v2160_v29, %s2871_s0  ;;  %2228 = vrot.lane.b32.xlu0 %v2192_v53, %s2873_s8  ;;  %v2398_v29 = vld [vmem:[%s4581_s2 + $0x438] sm:$0xff]  ;;  %v2393_v53 = vld [vmem:[%s4581_s2 + $0x410] sm:$0xff] }
 0xa28   :  { %2493 = vmatpush.msrb.mxu1 %v2393_v53 }
 0xa2e   :  { %v2067_v13 = vpop.f32.mrf.mxu0  ;;  %v2195_v61 = vpop.f32.mrf.mxu3 }
 0xa2f   :  { %2820 = vrot.lane.b32.xlu0 %v2819_v16, %s2871_s0  ;;  %2825 = vrot.lane.b32.xlu1 %v2824_v33, %s2871_s0  ;;  %v2829_v32 = vpack.i.bf16 %v2067_v13, %v2064_v11  ;;  %v2380_v11 = vld [vmem:[%s4581_s2 + $0x3a8] sm:$0xff]  ;;  %v2379_v13 = vld [vmem:[%s4581_s2 + $0x3a0] sm:$0xff] }
 0xa30   :  { %2230 = vrot.lane.b32.xlu2 %v2195_v61, %s2873_s8  ;;  %v2369_v61 = vld [vmem:[%s4581_s2 + $0x350] sm:$0xff] }
 0xa31   :  { %2418 = vmatpush.msrb.mxu2 %v2369_v61 }
 0xa36   :  { %v2070_v9 = vpop.f32.mrf.mxu0 }
 0xa37   :  { %2830 = vrot.lane.b32.xlu1 %v2829_v32, %s2873_s8  ;;  %v2377_v32 = vld [vmem:[%s4581_s2 + $0x390] sm:$0xff] }
 0xa3e   :  { %v2073_v51 = vpop.f32.mrf.mxu0 }
 0xa3f   :  { %v2834_v56 = vpack.i.bf16 %v2073_v51, %v2070_v9  ;;  %2332 = vrot.lane.b32.xlu1 %v2292_v45, %s2871_s0  ;;  %v2395_v45 = vld [vmem:[%s4581_s2 + $0x420] sm:$0xff]  ;;  %v2392_v9 = vld [vmem:[%s4581_s2 + $0x408] sm:$0xff] }
 0xa40   :  { %2494 = vmatpush.msrb.mxu1 %v2392_v9  ;;  %v2368_v51 = vld [vmem:[%s4581_s2 + $0x348] sm:$0xff] }
 0xa41   :  { %2835 = vrot.lane.b32.xlu2 %v2834_v56, %s2873_s8  ;;  %v2376_v56 = vld [vmem:[%s4581_s2 + $0x388] sm:$0xff]  ;;  %2419 = vmatpush.msrb.mxu2 %v2368_v51 }
 0xa46   :  { %v2076_v0 = vpop.f32.mrf.mxu0 }
 0xa47   :  { %1991 = vrot.lane.b32.xlu1 %v4254_v58, %s2871_s0 }
 0xa4e   :  { %v2321_v60 = vpop.f32.mrf.mxu0 }
 0xa4f   :  { %2111 = vrot.lane.b32.xlu1 %v2076_v0, %s2873_s8  ;;  %2344 = vrot.lane.b32.xlu0 %v2321_v60, %s2873_s8  ;;  %v2391_v0 = vld [vmem:[%s4581_s2 + $0x400] sm:$0xff] }
 0xa50   :  { %2495 = vmatpush.msrb.mxu1 %v2391_v0 }
 0xa52   :  { %2496 = vmatpush.msrb.mxu1 %v2390_v15 }
 0xa56   :  { %v2324_v6 = vpop.f32.mrf.mxu0 }
 0xa57   :  { %2346 = vrot.lane.b32.xlu1 %v2324_v6, %s2873_s8  ;;  %v2367_v6 = vld [vmem:[%s4581_s2 + $0x340] sm:$0xff] }
 0xa58   :  { %2420 = vmatpush.msrb.mxu2 %v2367_v6 }
 0xa5f   :  { %2336 = vrot.lane.b32.xlu1 %v2298_v28, %s2871_s0  ;;  %v2382_v28 = vld [vmem:[%s4581_s2 + $0x3b8] sm:$0xff] }
 0xa71   :  { %v2225_v2 = vpop.permute.xlu2 %2224 }
 0xa72   :  { %v2243_v24 = vsel %vm1182_vm11, %v2238_v47, %v2225_v2  ;;  %v2366_v47 = vld [vmem:[%s4581_s2 + $0x338] sm:$0xff]  ;;  %v2389_v2 = vld [vmem:[%s4581_s2 + $0x3f0] sm:$0xff] }
 0xa73   :  { %2254 = vrot.lane.b32.xlu0 %v2243_v24, %s2874_s7  ;;  %v2374_v24 = vld [vmem:[%s4581_s2 + $0x378] sm:$0xff]  ;;  %2421 = vmatpush.msrb.mxu2 %v2366_v47 }
 0xa74   :  { %2497 = vmatpush.msrb.mxu1 %v2389_v2 }
 0xa79   :  { %v2209_v49 = vpop.permute.xlu2 %2208 }
 0xa7a   :  { %v2240_v18 = vsel %vm354_vm6, %v4113_v23, %v2209_v49  ;;  %v2386_v23 = vld [vmem:[%s4581_s2 + $0x3d8] sm:$0xff] }
 0xa7b   :  { %2452 = vmatpush.msrb.mxu3 %v2386_v23 }
 0xa81   :  { %v2223_v20 = vpop.permute.xlu0 %2222 }
 0xa82   :  { %v2242_v12 = vsel %vm1182_vm11, %v2237_v7, %v2223_v20  ;;  %v2365_v7 = vld [vmem:[%s4581_s2 + $0x330] sm:$0xff]  ;;  %v2388_v20 = vld [vmem:[%s4581_s2 + $0x3e8] sm:$0xff] }
 0xa83   :  { %2252 = vrot.lane.b32.xlu2 %v2242_v12, %s2874_s7  ;;  %2422 = vmatpush.msrb.mxu2 %v2365_v7 }
 0xa84   :  { %2498 = vmatpush.msrb.mxu1 %v2388_v20 }
 0xa85   :  { %2423 = vmatpush.msrb.mxu2 %v2364_v8 }
 0xa86   :  { %2499 = vmatpush.msrb.mxu1 %v2387_v36 }
 0xa89   :  { %v2207_v54 = vpop.permute.xlu0 %2206 }
 0xa8a   :  { %v2239_v22 = vsel %vm354_vm6, %v4118_v31, %v2207_v54  ;;  %v2401_v31 = vld [vmem:[%s4581_s2 + $0x450] sm:$0xff]  ;;  %v2231_v40 = vpop.permute.xlu2 %2230  ;;  %v2372_v54 = vld [vmem:[%s4581_s2 + $0x368] sm:$0xff] }
 0xa8b   :  { %1999 = vrot.lane.b32.xlu2 %v1983_v59, %s2873_s8  ;;  %2549 = vmatpush.msra.mxu0 %v2401_v31  ;;  %v2327_v59 = vpop.f32.mrf.mxu0 }
 0xa8d   :  { %2550 = vmatpush.msra.mxu0 %v2400_v41 }
 0xa8f   :  { %2551 = vmatpush.msra.mxu0 %v2399_v19 }
 0xa91   :  { %v2227_v5 = vpop.permute.xlu1 %2226  ;;  %2552 = vmatpush.msra.mxu0 %v2398_v29 }
 0xa92   :  { %v2244_v34 = vsel %vm1182_vm11, %v2239_v22, %v2227_v5  ;;  %v2363_v5 = vld [vmem:[%s4581_s2 + $0x320] sm:$0xff] }
 0xa93   :  { %2334 = vrot.lane.b32.xlu2 %v4278_v46, %s2871_s0  ;;  %2256 = vrot.lane.b32.xlu0 %v2244_v34, %s2874_s7  ;;  %v2383_v46 = vld [vmem:[%s4581_s2 + $0x3c0] sm:$0xff] }
 0xa94   :  { %2553 = vmatpush.msra.mxu0 %v2397_v30  ;;  %v2371_v34 = vld [vmem:[%s4581_s2 + $0x360] sm:$0xff]  ;;  %2424 = vmatpush.msrb.mxu2 %v2363_v5 }
 0xa96   :  { %2554 = vmatpush.msra.mxu0 %v2396_v57  ;;  %2425 = vmatpush.msrb.mxu2 %v2362_v37 }
 0xa98   :  { %2555 = vmatpush.msra.mxu0 %v2395_v45  ;;  %2426 = vmatpush.msrb.mxu2 %v2361_v26 }
 0xa99   :  { %v2229_v39 = vpop.permute.xlu0 %2228  ;;  %v2211_v3 = vpop.permute.xlu1 %2210 }
 0xa9a   :  { %v2245_v58 = vsel %vm1182_vm11, %v2240_v18, %v2229_v39  ;;  %v2241_v16 = vsel %vm354_vm6, %v4107_v35, %v2211_v3  ;;  %v2384_v35 = vld [vmem:[%s4581_s2 + $0x3c8] sm:$0xff]  ;;  %v2359_v39 = vld [vmem:[%s4581_s2 + $0x300] sm:$0xff] }
 0xa9b   :  { %2258 = vrot.lane.b32.xlu2 %v2245_v58, %s2874_s7  ;;  %2091 = vrot.lane.b32.xlu0 %v4269_v1, %s2871_s0  ;;  %v2246_v33 = vsel %vm1182_vm11, %v2241_v16, %v2231_v40  ;;  %v2385_v1 = vld [vmem:[%s4581_s2 + $0x3d0] sm:$0xff]  ;;  %v2360_v18 = vld [vmem:[%s4581_s2 + $0x308] sm:$0xff]  ;;  %v2836_v58 = vpop.permute.xlu2 %2835 }
 0xa9c   :  { %2453 = vmatpush.msrb.mxu3 %v2385_v1  ;;  %2427 = vmatpush.msrb.mxu2 %v2360_v18  ;;  %v2838_v6 = vunpack.i.h.bf16 %v2836_v58 }
 0xa9e   :  { %2454 = vmatpush.msrb.mxu3 %v2384_v35  ;;  %2428 = vmatpush.msrb.mxu2 %v2359_v39 }
 0xaa0   :  { %2455 = vmatpush.msrb.mxu3 %v2383_v46 }
 0xaa1   :  { %v4391_v25 = vpop.permute.xlu1 %2825  ;;  %v2821_v12 = vpop.permute.xlu0 %2820 }
 0xaa2   :  { %2456 = vmatpush.msrb.mxu3 %v2382_v28  ;;  %v2822_v19 = vunpack.i.l.bf16 %v2821_v12  ;;  %v2823_v40 = vunpack.i.h.bf16 %v2821_v12  ;;  %v2827_v53 = vunpack.i.l.bf16 %v4391_v25 }
 0xaa3   :  { %1993 = vrot.lane.b32.xlu2 %v4256_v27, %s2871_s0  ;;  %2260 = vrot.lane.b32.xlu0 %v2246_v33, %s2874_s7  ;;  %v2381_v27 = vld [vmem:[%s4581_s2 + $0x3b0] sm:$0xff] }
 0xaa4   :  { %2457 = vmatpush.msrb.mxu3 %v2381_v27  ;;  %v2118_v23 = vsel %vm354_vm6, %v4204_v55, %v2822_v19  ;;  %v2119_v1 = vsel %vm354_vm6, %v4200_v4, %v2823_v40  ;;  %v2120_v61 = vsel %vm354_vm6, %v4196_v48, %v2827_v53 }
 0xaa6   :  { %2458 = vmatpush.msrb.mxu3 %v2380_v11 }
 0xaa8   :  { %2459 = vmatpush.msrb.mxu3 %v2379_v13  ;;  %v2837_v13 = vunpack.i.l.bf16 %v2836_v58 }
 0xaa9   :  { %v4432_v60 = vpop.permute.xlu1 %2830 }
 0xaaa   :  { %v2833_v57 = vunpack.i.h.bf16 %v4432_v60 }
 0xaab   :  { %2001 = vrot.lane.b32.xlu0 %v4289_v43, %s2873_s8  ;;  %2348 = vrot.lane.b32.xlu2 %v2327_v59, %s2873_s8  ;;  %v2378_v43 = vld [vmem:[%s4581_s2 + $0x398] sm:$0xff] }
 0xaac   :  { %2460 = vmatpush.msrb.mxu3 %v2378_v43  ;;  %v2124_v46 = vsel %vm1182_vm11, %v2119_v1, %v2833_v57 }
 0xaae   :  { %2461 = vmatpush.msrb.mxu3 %v2377_v32 }
 0xab0   :  { %2462 = vmatpush.msrb.mxu3 %v2376_v56  ;;  %v2828_v56 = vunpack.i.h.bf16 %v4391_v25 }
 0xab1   :  { %v2333_v22 = vpop.permute.xlu1 %2332 }
 0xab2   :  { %2463 = vmatpush.msrb.mxu3 %v2375_v42  ;;  %v2353_v31 = vsel %vm354_vm6, %v4221_v63, %v2333_v22  ;;  %v2832_v63 = vunpack.i.l.bf16 %v4432_v60  ;;  %v2121_v48 = vsel %vm354_vm6, %v4188_v38, %v2828_v56 }
 0xab3   :  { %v2126_v15 = vsel %vm1182_vm11, %v2121_v48, %v2838_v6 }
 0xab4   :  { %2464 = vmatpush.msrb.mxu3 %v2374_v24  ;;  %v2123_v3 = vsel %vm1182_vm11, %v2118_v23, %v2832_v63 }
 0xab6   :  { %2465 = vmatpush.msrb.mxu3 %v2373_v17 }
 0xab8   :  { %2466 = vmatpush.msrb.mxu3 %v2372_v54 }
 0xab9   :  { %v1992_v29 = vpop.permute.xlu1 %1991 }
 0xaba   :  { %2467 = vmatpush.msrb.mxu3 %v2371_v34  ;;  %v2005_v45 = vsel %vm354_vm6, %v4175_v50, %v1992_v29 }
 0xac1   :  { %v2345_v49 = vpop.permute.xlu0 %2344  ;;  %v2112_v33 = vpop.permute.xlu1 %2111 }
 0xac2   :  { %v2356_v41 = vsel %vm1182_vm11, %v2353_v31, %v2345_v49 }
 0xac3   :  { %2780 = vmatmul.msk.f32.vlgmr.msra.gmra.mxu0 %vm819_vm8, %v2356_v41 }
 0xac9   :  { %v2347_v21 = vpop.permute.xlu1 %2346 }
 0xad1   :  { %v2337_v43 = vpop.permute.xlu1 %2336 }
 0xad2   :  { %v2355_v32 = vsel %vm354_vm6, %v4207_v10, %v2337_v43 }
 0xadd   :  { %v2253_v30 = vpop.permute.xlu2 %2252 }
 0xade   :  { %v2267_v16 = vsel %vm819_vm8, %v2123_v3, %v2253_v30  ;;  %2775 = vmatmul.msk.f32.vlgmr.msrb.gmra.mxu1 %vm1182_vm11, %v2253_v30 }
 0xadf   :  { %2468 = vmatmul.f32.vlgmr.msrb.gmra.mxu3 %v2267_v16 }
 0xae5   :  { %v2000_v35 = vpop.permute.xlu2 %1999  ;;  %v2255_v55 = vpop.permute.xlu0 %2254 }
 0xae6   :  { %v2007_v28 = vsel %vm1182_vm11, %v2005_v45, %v2000_v35  ;;  %2776 = vmatmul.msk.f32.gmra.mxu1 %vm1182_vm11, %v2255_v55  ;;  %v2268_v59 = vsel %vm819_vm8, %v2124_v46, %v2255_v55 }
 0xae7   :  { %2773 = vmatmul.msk.f32.vlgmr.msrb.gmra.mxu2 %vm819_vm8, %v2007_v28  ;;  %2471 = vmatmul.f32.gmra.mxu3 %v2268_v59 }
 0xaed   :  { %v2335_v27 = vpop.permute.xlu2 %2334 }
 0xaee   :  { %v2354_v4 = vsel %vm354_vm6, %v4217_v62, %v2335_v27  ;;  %v2125_v62 = vsel %vm1182_vm11, %v2120_v61, %v2837_v13 }
 0xaef   :  { %v2357_v50 = vsel %vm1182_vm11, %v2354_v4, %v2347_v21 }
 0xaf0   :  { %2781 = vmatmul.msk.f32.gmra.mxu0 %vm819_vm8, %v2357_v50 }
 0xaf5   :  { %v2259_v44 = vpop.permute.xlu2 %2258 }
 0xaf6   :  { %v2270_v25 = vsel %vm819_vm8, %v2126_v15, %v2259_v44 }
 0xafd   :  { %v1994_v11 = vpop.permute.xlu2 %1993 }
 0xafe   :  { %v2006_v38 = vsel %vm354_vm6, %v4170_v14, %v1994_v11 }
 0xb05   :  { %v2257_v9 = vpop.permute.xlu0 %2256  ;;  %v2349_v51 = vpop.permute.xlu2 %2348 }
 0xb06   :  { %v2358_v0 = vsel %vm1182_vm11, %v2355_v32, %v2349_v51  ;;  %2777 = vmatmul.msk.f32.gmra.mxu1 %vm1182_vm11, %v2257_v9  ;;  %v2269_v60 = vsel %vm819_vm8, %v2125_v62, %v2257_v9 }
 0xb07   :  { %2474 = vmatmul.f32.gmra.mxu3 %v2269_v60  ;;  %2782 = vmatmul.msk.f32.gmra.mxu0 %vm819_vm8, %v2358_v0 }
 0xb0d   :  { %v2092_v10 = vpop.permute.xlu0 %2091 }
 0xb0e   :  { %2778 = vmatmul.msk.f32.gmra.mxu1 %vm1182_vm11, %v2259_v44  ;;  %v2122_v42 = vsel %vm354_vm6, %v4179_v52, %v2092_v10 }
 0xb0f   :  { %2477 = vmatmul.f32.gmra.mxu3 %v2270_v25  ;;  %v2127_v2 = vsel %vm1182_vm11, %v2122_v42, %v2112_v33 }
 0xb15   :  { %v2261_v47 = vpop.permute.xlu0 %2260 }
 0xb16   :  { %2779 = vmatmul.msk.f32.gmra.mxu1 %vm1182_vm11, %v2261_v47  ;;  %v2271_v24 = vsel %vm819_vm8, %v2127_v2, %v2261_v47 }
 0xb17   :  { %2480 = vmatmul.f32.gmra.mxu3 %v2271_v24 }
 0xb1d   :  { %v2002_v7 = vpop.permute.xlu0 %2001 }
 0xb1e   :  { %v2008_v20 = vsel %vm1182_vm11, %v2006_v38, %v2002_v7 }
 0xb1f   :  { %2774 = vmatmul.msk.f32.gmra.mxu2 %vm819_vm8, %v2008_v20 }
 0xb40   :  { %v2557_v12 = vpop.f32.mrf.mxu0 }
 0xb41   :  { %vm2566_vm1 = vcmp.gt.f32.partialorder %v2557_v12, 0.0  ;;  %v2569_v17 = vmul.f32 0.01, %v2557_v12 }
 0xb43   :  { %v2572_v52 = vsel %vm2566_vm1, %v2557_v12, %v2569_v17 }
 0xb44   :  { %2584 = vst.msk [vmem:[%s4582_s3 + $0x38] sm:$0xff] %vm216_vm5, %v2572_v52 }
 0xb5b   :  { %v2501_v8 = vpop.f32.mrf.mxu1 }
 0xb62   :  { %v2469_v36 = vpop.f32.mrf.mxu3 }
 0xb63   :  { %v2502_v54 = vadd.f32 %v2501_v8, %v2469_v36  ;;  %v2504_v5 = vpop.f32.mrf.mxu1 }
 0xb65   :  { %vm2516_vm3 = vcmp.gt.f32.partialorder %v2502_v54, 0.0  ;;  %v2521_v22 = vmul.f32 0.01, %v2502_v54 }
 0xb67   :  { %v2526_v14 = vsel %vm2516_vm3, %v2502_v54, %v2521_v22 }
 0xb68   :  { %2579 = vst.msk [vmem:[%s4582_s3 + $0x10] sm:$0xff] %vm216_vm5, %v2526_v14 }
 0xb6a   :  { %v2430_v34 = vpop.f32.mrf.mxu2  ;;  %v2472_v37 = vpop.f32.mrf.mxu3 }
 0xb6b   :  { %vm2436_vm4 = vcmp.gt.f32.partialorder %v2430_v34, 0.0  ;;  %v2438_v26 = vmul.f32 0.01, %v2430_v34  ;;  %v2505_v31 = vadd.f32 %v2504_v5, %v2472_v37 }
 0xb6d   :  { %v2440_v49 = vsel %vm2436_vm4, %v2430_v34, %v2438_v26  ;;  %vm2517_vm6 = vcmp.gt.f32.partialorder %v2505_v31, 0.0  ;;  %v2522_v41 = vmul.f32 0.01, %v2505_v31  ;;  %v2560_v18 = vpop.f32.mrf.mxu0 }
 0xb6e   :  { %2577 = vst.msk [vmem:[%s4582_s3] sm:$0xff] %vm216_vm5, %v2440_v49  ;;  %vm2567_vm8 = vcmp.gt.f32.partialorder %v2560_v18, 0.0  ;;  %v2570_v39 = vmul.f32 0.01, %v2560_v18 }
 0xb6f   :  { %v2527_v58 = vsel %vm2517_vm6, %v2505_v31, %v2522_v41 }
 0xb70   :  { %2580 = vst.msk [vmem:[%s4582_s3 + $0x18] sm:$0xff] %vm216_vm5, %v2527_v58  ;;  %v2573_v19 = vsel %vm2567_vm8, %v2560_v18, %v2570_v39 }
 0xb71   :  { %2585 = vst.msk [vmem:[%s4582_s3 + $0x40] sm:$0xff] %vm216_vm5, %v2573_v19 }
 0xb83   :  { %v2507_v23 = vpop.f32.mrf.mxu1 }
 0xb84   :  { %v2563_v63 = vpop.f32.mrf.mxu0 }
 0xb85   :  { %vm2568_vm11 = vcmp.gt.f32.partialorder %v2563_v63, 0.0  ;;  %v2571_v29 = vmul.f32 0.01, %v2563_v63 }
 0xb87   :  { %v2574_v3 = vsel %vm2568_vm11, %v2563_v63, %v2571_v29 }
 0xb88   :  { %v2576_v30 = vsel %vm134_vm2, %v2574_v3, 0.0 }
 0xb89   :  { %2586 = vst.msk [vmem:[%s4582_s3 + $0x48] sm:$0xff] %vm216_vm5, %v2576_v30 }
 0xb8a   :  { %v2475_v16 = vpop.f32.mrf.mxu3 }
 0xb8b   :  { %v2508_v40 = vadd.f32 %v2507_v23, %v2475_v16  ;;  %v2510_v1 = vpop.f32.mrf.mxu1 }
 0xb8d   :  { %vm2518_vm15 = vcmp.gt.f32.partialorder %v2508_v40, 0.0  ;;  %v2523_v57 = vmul.f32 0.01, %v2508_v40 }
 0xb8f   :  { %v2528_v33 = vsel %vm2518_vm15, %v2508_v40, %v2523_v57 }
 0xb90   :  { %2581 = vst.msk [vmem:[%s4582_s3 + $0x20] sm:$0xff] %vm216_vm5, %v2528_v33 }
 0xb92   :  { %v2478_v45 = vpop.f32.mrf.mxu3 }
 0xb93   :  { %v2511_v35 = vadd.f32 %v2510_v1, %v2478_v45  ;;  %v2513_v28 = vpop.f32.mrf.mxu1 }
 0xb95   :  { %vm2519_vm7 = vcmp.gt.f32.partialorder %v2511_v35, 0.0  ;;  %v2524_v55 = vmul.f32 0.01, %v2511_v35 }
 0xb97   :  { %v2529_v46 = vsel %vm2519_vm7, %v2511_v35, %v2524_v55 }
 0xb98   :  { %2582 = vst.msk [vmem:[%s4582_s3 + $0x28] sm:$0xff] %vm216_vm5, %v2529_v46 }
 0xb9a   :  { %v2481_v59 = vpop.f32.mrf.mxu3 }
 0xb9b   :  { %v2514_v27 = vadd.f32 %v2513_v28, %v2481_v59 }
 0xb9d   :  { %vm2520_vm2 = vcmp.gt.f32.partialorder %v2514_v27, 0.0  ;;  %v2525_v21 = vmul.f32 0.01, %v2514_v27 }
 0xb9f   :  { %v2530_v4 = vsel %vm2520_vm2, %v2514_v27, %v2525_v21 }
 0xba0   :  { %v2575_v50 = vsel %vm33_vm0, %v2530_v4, 0.0 }
 0xba1   :  { %2583 = vst.msk [vmem:[%s4582_s3 + $0x30] sm:$0xff] %vm216_vm5, %v2575_v50 }
 0xba2   :  { %v2433_v44 = vpop.f32.mrf.mxu2 }
 0xba3   :  { %vm2437_vm9 = vcmp.gt.f32.partialorder %v2433_v44, 0.0  ;;  %v2439_v11 = vmul.f32 0.01, %v2433_v44 }
 0xba5   :  { %v2441_v53 = vsel %vm2437_vm9, %v2433_v44, %v2439_v11 }
 0xba6   :  { %2578 = vst.msk [vmem:[%s4582_s3 + $0x8] sm:$0xff] %vm216_vm5, %v2441_v53 }

</bundles_post_ra>
